<compile_context>
chip_gen: v7x
topology: tpu7x:2x2x1
jax: 0.10.0
libtpu: 0.0.40
codegen_flags: <defaults>
</compile_context>

<pallas_src>
import functools

import jax
import jax.numpy as jnp
from jax.experimental import pallas as pl
from jax.experimental.pallas import tpu as pltpu

NEG_SLOPE = 0.01  # F.leaky_relu default negative_slope


def _leaky(x):
    return jnp.where(x > 0, x, NEG_SLOPE * x)


# --------------------------------------------------------------------------
# Fused kernel: one batch tile (tb elements, tb*N flattened points) per step
# --------------------------------------------------------------------------

def _fused_kernel(x_ref, p_ref, invn_ref, e_ref,
                  wl1_ref, bl1_ref, wl2_ref, bl2_ref,
                  wg1s_ref, wg1m_ref, bg1_ref, wg2_ref, bg2_ref,
                  wG1m_ref, wG1s_ref, wG1g_ref, bG1_ref, wG2_ref, bG2_ref,
                  wL1x_ref, wL1g_ref, bL1_ref, wL2_ref, bL2_ref,
                  out_ref, *, sum_scale, matmul_dtype):
    f32 = jnp.float32

    def mm(a, b):
        return jnp.dot(a.astype(matmul_dtype), b.astype(matmul_dtype),
                       preferred_element_type=f32)

    x = x_ref[...]          # (tb*N, D)  flattened points of this batch tile
    P = p_ref[...]          # (tb, tb*N) block-diag mask rows -> masked sum pool
    inv_n = invn_ref[...]   # (tb, 1)    1 / sum(mask) per batch element
    E = e_ref[...]          # (tb*N, tb) expansion: broadcast global -> points

    # ---- head: fc_l1, fc_l2 (+residual) ----
    h = _leaky(mm(x, wl1_ref[...]) + bl1_ref[...])
    h = _leaky(mm(h, wl2_ref[...]) + bl2_ref[...] + h)              # (tb*N, H)

    # ---- head pooling + fc_g1, fc_g2 ----
    zsum = mm(P, h)                                                 # (tb, H)
    zmean = zsum * inv_n
    zsum = zsum * sum_scale
    g = _leaky(mm(zsum, wg1s_ref[...]) + mm(zmean, wg1m_ref[...]) + bg1_ref[...])
    g = _leaky(mm(g, wg2_ref[...]) + bg2_ref[...])                  # (tb, L)

    # ---- EPiC layers, statically unrolled over stacked weight buffers ----
    num_layers = wG1m_ref.shape[0]
    for l in range(num_layers):
        psum = mm(P, h)                                             # (tb, H)
        pmean = psum * inv_n
        psum = psum * sum_scale
        # cat(mean, sum, x_global) @ WG1 — split weights, no concat needed
        g1 = _leaky(mm(pmean, wG1m_ref[l]) + mm(psum, wG1s_ref[l])
                    + mm(g, wG1g_ref[l]) + bG1_ref[l])
        g = _leaky(mm(g1, wG2_ref[l]) + bG2_ref[l] + g)             # residual

        # cat(x_local, broadcast(x_global)) @ WL1 — broadcast done via E matmul
        gterm = mm(g, wL1g_ref[l])                                  # (tb, H)
        gb = mm(E, gterm)                                           # (tb*N, H)
        l1 = _leaky(mm(h, wL1x_ref[l]) + gb + bL1_ref[l])
        h = _leaky(mm(l1, wL2_ref[l]) + bL2_ref[l] + h)             # residual

    # ---- final pooling + concat(sum, mean, global) ----
    s = mm(P, h)
    mean = s * inv_n
    s = s * sum_scale
    H = h.shape[1]
    L = g.shape[1]
    out_ref[:, 0:H] = s
    out_ref[:, H:2 * H] = mean
    out_ref[:, 2 * H:2 * H + L] = g


# --------------------------------------------------------------------------
# pallas_call wrapper
# --------------------------------------------------------------------------

def _const_spec(arr):
    nd = arr.ndim
    return pl.BlockSpec(arr.shape, lambda b, _nd=nd: (0,) * _nd)


def epic_discriminator_2_forward(x_local, mask, params, *, sum_scale=0.01,
                                 matmul_dtype=jnp.float32,
                                 block_batch=None, vmem_limit_bytes=None):
    """Pallas implementation of EPiC_discriminator_2.forward (no t / cond)."""
    B, N, D = x_local.shape
    H = params["wl1"].shape[1]
    L = params["wg2"].shape[1]

    x_local = x_local.astype(jnp.float32)
    if mask is None:
        mask2 = jnp.ones((B, N), jnp.float32)
    else:
        mask2 = mask.reshape(B, N).astype(jnp.float32)

    # pad point axis to a sublane multiple (padded points carry mask=0)
    N_pad = -(-N // 8) * 8
    if N_pad != N:
        x_local = jnp.pad(x_local, ((0, 0), (0, N_pad - N), (0, 0)))
        mask2 = jnp.pad(mask2, ((0, 0), (0, N_pad - N)))
        N = N_pad

    # batch tile: enough elements per grid step that local matmuls see >=256
    # rows; pad batch (padded elements use mask=1 to avoid div-by-zero and
    # are sliced off at the end).
    if block_batch is None:
        tb = min(B, max(1, -(-256 // N)))
    else:
        tb = min(block_batch, B)
    B_pad = -(-B // tb) * tb
    if B_pad != B:
        x_local = jnp.concatenate(
            [x_local, jnp.zeros((B_pad - B, N, D), jnp.float32)], axis=0)
        mask2 = jnp.concatenate(
            [mask2, jnp.ones((B_pad - B, N), jnp.float32)], axis=0)
    nt = B_pad // tb

    # flattened points, mask-folded pooling matrix, 1/n, expansion matrix
    x_flat = x_local.reshape(B_pad * N, D)
    m3 = mask2.reshape(nt, tb, N)
    P_full = (jnp.eye(tb, dtype=jnp.float32)[None, :, :, None]
              * m3[:, None, :, :]).reshape(nt, tb, tb * N)
    inv_n = (1.0 / jnp.sum(mask2, axis=1, keepdims=True)).reshape(nt, tb, 1)
    E = jnp.repeat(jnp.eye(tb, dtype=jnp.float32), N, axis=0)       # (tb*N, tb)

    cw = lambda w: w.astype(matmul_dtype)       # matmul operands
    cb = lambda b_: b_.astype(jnp.float32)      # biases stay f32
    wg1 = params["wg1"]
    head_w = [cw(params["wl1"]), cb(params["bl1"]),
              cw(params["wl2"]), cb(params["bl2"]),
              cw(wg1[:H, :]), cw(wg1[H:, :]), cb(params["bg1"]),
              cw(params["wg2"]), cb(params["bg2"])]

    lys = params["layers"]
    stack = lambda fn: jnp.stack([fn(lp) for lp in lys])
    layer_w = [stack(lambda lp: cw(lp["wG1"][:H, :])),       # mean part
               stack(lambda lp: cw(lp["wG1"][H:2 * H, :])),  # sum part
               stack(lambda lp: cw(lp["wG1"][2 * H:, :])),   # global part
               stack(lambda lp: cb(lp["bG1"])),
               stack(lambda lp: cw(lp["wG2"])),
               stack(lambda lp: cb(lp["bG2"])),
               stack(lambda lp: cw(lp["wL1"][:H, :])),       # local part
               stack(lambda lp: cw(lp["wL1"][H:, :])),       # global part
               stack(lambda lp: cb(lp["bL1"])),
               stack(lambda lp: cw(lp["wL2"])),
               stack(lambda lp: cb(lp["bL2"]))]
    weights = head_w + layer_w

    in_specs = ([pl.BlockSpec((tb * N, D), lambda b: (b, 0)),
                 pl.BlockSpec((None, tb, tb * N), lambda b: (b, 0, 0)),
                 pl.BlockSpec((None, tb, 1), lambda b: (b, 0, 0)),
                 pl.BlockSpec((tb * N, tb), lambda b: (0, 0))]
                + [_const_spec(w) for w in weights])

    out_dim = 2 * H + L
    cp_kwargs = dict(dimension_semantics=("parallel",))
    if vmem_limit_bytes is not None:
        cp_kwargs["vmem_limit_bytes"] = vmem_limit_bytes

    out = pl.pallas_call(
        functools.partial(_fused_kernel, sum_scale=sum_scale,
                          matmul_dtype=matmul_dtype),
        grid=(nt,),
        in_specs=in_specs,
        out_specs=pl.BlockSpec((None, tb, out_dim), lambda b: (b, 0, 0)),
        out_shape=jax.ShapeDtypeStruct((nt, tb, out_dim), jnp.float32),
        compiler_params=pltpu.CompilerParams(**cp_kwargs),
    )(x_flat, P_full, inv_n, E, *weights)

    return out.reshape(B_pad, out_dim)[:B]


# --------------------------------------------------------------------------
# Deterministic parameter init (nn.Linear-style uniform; weight_norm at init
# reproduces the underlying weight, so plain linear weights are equivalent).
# --------------------------------------------------------------------------

def _linear(key, fan_in, fan_out):
    kw, kb = jax.random.split(key)
    bound = 1.0 / (fan_in ** 0.5)
    w = jax.random.uniform(kw, (fan_in, fan_out), jnp.float32, -bound, bound)
    b = jax.random.uniform(kb, (1, fan_out), jnp.float32, -bound, bound)
    return w, b


def init_params(key, *, input_dim, hid_d, latent, equiv_layers):
    keys = jax.random.split(key, 4 + 4 * equiv_layers)
    p = {}
    p["wl1"], p["bl1"] = _linear(keys[0], input_dim, hid_d)
    p["wl2"], p["bl2"] = _linear(keys[1], hid_d, hid_d)
    p["wg1"], p["bg1"] = _linear(keys[2], 2 * hid_d, hid_d)
    p["wg2"], p["bg2"] = _linear(keys[3], hid_d, latent)
    layers = []
    for i in range(equiv_layers):
        base = 4 + 4 * i
        lp = {}
        lp["wG1"], lp["bG1"] = _linear(keys[base + 0], 2 * hid_d + latent, hid_d)
        lp["wG2"], lp["bG2"] = _linear(keys[base + 1], hid_d, latent)
        lp["wL1"], lp["bL1"] = _linear(keys[base + 2], hid_d + latent, hid_d)
        lp["wL2"], lp["bL2"] = _linear(keys[base + 3], hid_d, hid_d)
        layers.append(lp)
    p["layers"] = layers
    return p


# --------------------------------------------------------------------------
# Pure-JAX reference (correctness check only)
# --------------------------------------------------------------------------

def _ref_forward(x_local, mask, p, sum_scale):
    lk = lambda v: jnp.where(v > 0, v, NEG_SLOPE * v)
    h = lk(x_local @ p["wl1"] + p["bl1"])
    h = lk(h @ p["wl2"] + p["bl2"] + h)
    zsum = jnp.sum(h * mask, axis=-2)
    zmean = zsum / jnp.sum(mask, axis=-2)
    zsum = zsum * sum_scale
    xg = jnp.concatenate([zsum, zmean], axis=-1)
    xg = lk(xg @ p["wg1"] + p["bg1"])
    xg = lk(xg @ p["wg2"] + p["bg2"])
    for lp in p["layers"]:
        psum = jnp.sum(h * mask, axis=-2)
        pmean = psum / jnp.sum(mask, axis=-2)
        psum = psum * sum_scale
        cat = jnp.concatenate([pmean, psum, xg], axis=-1)
        g1 = lk(cat @ lp["wG1"] + lp["bG1"])
        xg = lk(g1 @ lp["wG2"] + lp["bG2"] + xg)
        g2l = jnp.broadcast_to(xg[:, None, :], (h.shape[0], h.shape[1], xg.shape[-1]))
        lcat = jnp.concatenate([h, g2l], axis=-1)
        l1 = lk(lcat @ lp["wL1"] + lp["bL1"])
        h = lk(l1 @ lp["wL2"] + lp["bL2"] + h)
    s = jnp.sum(h * mask, axis=-2)
    mean = s / jnp.sum(mask, axis=-2)
    s = s * sum_scale
    return jnp.concatenate([s, mean, xg], axis=-1)


# --------------------------------------------------------------------------

if __name__ == "__main__":
    # small but structurally faithful hyper-parameters
    B, N = 2, 32                 # batch, num_points
    INPUT_DIM = 3
    HID_D = 128
    LATENT = 16
    EQUIV_LAYERS = 2
    SUM_SCALE = 0.01

    key = jax.random.PRNGKey(0)
    k_x, k_p = jax.random.split(key)

    x_local = jax.random.normal(k_x, (B, N, INPUT_DIM), dtype=jnp.float32)
    mask = jnp.ones((B, N, 1), dtype=jnp.float32)
    mask = mask.at[1, N - 8:, :].set(0.0)     # ragged second point cloud

    params = init_params(k_p, input_dim=INPUT_DIM, hid_d=HID_D,
                         latent=LATENT, equiv_layers=EQUIV_LAYERS)

    ref = jax.block_until_ready(_ref_forward(x_local, mask, params, SUM_SCALE))

    # f32 matmul path: tight check against the pure-JAX reference
    out = jax.block_until_ready(
        epic_discriminator_2_forward(x_local, mask, params, sum_scale=SUM_SCALE))
    assert out.shape == (B, 2 * HID_D + LATENT), out.shape
    assert jnp.allclose(out, ref, atol=1e-3, rtol=1e-3), \
        float(jnp.max(jnp.abs(out - ref)))

    # bf16 matmul operands (f32 accumulation / residuals): loose check
    out_bf16 = jax.block_until_ready(
        epic_discriminator_2_forward(x_local, mask, params, sum_scale=SUM_SCALE,
                                     matmul_dtype=jnp.bfloat16))
    rel = float(jnp.max(jnp.abs(out_bf16 - ref)) /
                (jnp.max(jnp.abs(ref)) + 1e-6))
    assert rel < 0.1, rel

    print("KERNEL_OK")
</pallas_src>

<mosaic_0001>
module attributes {stable_mosaic.version = 11 : i64} {
  func.func @_fused_kernel(%arg0: i32, %arg1: memref<64x3xf32, #tpu.memory_space<vmem>>, %arg2: memref<1x2x64xf32, #tpu.memory_space<vmem>>, %arg3: memref<1x2x1xf32, #tpu.memory_space<vmem>>, %arg4: memref<64x2xf32, #tpu.memory_space<vmem>>, %arg5: memref<3x128xf32, #tpu.memory_space<vmem>>, %arg6: memref<1x128xf32, #tpu.memory_space<vmem>>, %arg7: memref<128x128xf32, #tpu.memory_space<vmem>>, %arg8: memref<1x128xf32, #tpu.memory_space<vmem>>, %arg9: memref<128x128xf32, #tpu.memory_space<vmem>>, %arg10: memref<128x128xf32, #tpu.memory_space<vmem>>, %arg11: memref<1x128xf32, #tpu.memory_space<vmem>>, %arg12: memref<128x16xf32, #tpu.memory_space<vmem>>, %arg13: memref<1x16xf32, #tpu.memory_space<vmem>>, %arg14: memref<2x128x128xf32, #tpu.memory_space<vmem>>, %arg15: memref<2x128x128xf32, #tpu.memory_space<vmem>>, %arg16: memref<2x16x128xf32, #tpu.memory_space<vmem>>, %arg17: memref<2x1x128xf32, #tpu.memory_space<vmem>>, %arg18: memref<2x128x16xf32, #tpu.memory_space<vmem>>, %arg19: memref<2x1x16xf32, #tpu.memory_space<vmem>>, %arg20: memref<2x128x128xf32, #tpu.memory_space<vmem>>, %arg21: memref<2x16x128xf32, #tpu.memory_space<vmem>>, %arg22: memref<2x1x128xf32, #tpu.memory_space<vmem>>, %arg23: memref<2x128x128xf32, #tpu.memory_space<vmem>>, %arg24: memref<2x1x128xf32, #tpu.memory_space<vmem>>, %arg25: memref<1x2x272xf32, #tpu.memory_space<vmem>>) attributes {dimension_semantics = [#tpu.dimension_semantics<parallel>], iteration_bounds = array<i64: 1>, scalar_prefetch = 0 : i64, scratch_operands = 0 : i64, tpu.core_type = #tpu.core_type<tc>, window_params = [{transform_indices = @transform_0, window_bounds = array<i64: 64, 3>}, {transform_indices = @transform_1, window_bounds = array<i64: 1, 2, 64>}, {transform_indices = @transform_2, window_bounds = array<i64: 1, 2, 1>}, {pipeline_mode = #tpu.pipeline_mode<synchronous>, transform_indices = @transform_3, window_bounds = array<i64: 64, 2>}, {pipeline_mode = #tpu.pipeline_mode<synchronous>, transform_indices = @transform_4, window_bounds = array<i64: 3, 128>}, {pipeline_mode = #tpu.pipeline_mode<synchronous>, transform_indices = @transform_5, window_bounds = array<i64: 1, 128>}, {pipeline_mode = #tpu.pipeline_mode<synchronous>, transform_indices = @transform_6, window_bounds = array<i64: 128, 128>}, {pipeline_mode = #tpu.pipeline_mode<synchronous>, transform_indices = @transform_7, window_bounds = array<i64: 1, 128>}, {pipeline_mode = #tpu.pipeline_mode<synchronous>, transform_indices = @transform_8, window_bounds = array<i64: 128, 128>}, {pipeline_mode = #tpu.pipeline_mode<synchronous>, transform_indices = @transform_9, window_bounds = array<i64: 128, 128>}, {pipeline_mode = #tpu.pipeline_mode<synchronous>, transform_indices = @transform_10, window_bounds = array<i64: 1, 128>}, {pipeline_mode = #tpu.pipeline_mode<synchronous>, transform_indices = @transform_11, window_bounds = array<i64: 128, 16>}, {pipeline_mode = #tpu.pipeline_mode<synchronous>, transform_indices = @transform_12, window_bounds = array<i64: 1, 16>}, {pipeline_mode = #tpu.pipeline_mode<synchronous>, transform_indices = @transform_13, window_bounds = array<i64: 2, 128, 128>}, {pipeline_mode = #tpu.pipeline_mode<synchronous>, transform_indices = @transform_14, window_bounds = array<i64: 2, 128, 128>}, {pipeline_mode = #tpu.pipeline_mode<synchronous>, transform_indices = @transform_15, window_bounds = array<i64: 2, 16, 128>}, {pipeline_mode = #tpu.pipeline_mode<synchronous>, transform_indices = @transform_16, window_bounds = array<i64: 2, 1, 128>}, {pipeline_mode = #tpu.pipeline_mode<synchronous>, transform_indices = @transform_17, window_bounds = array<i64: 2, 128, 16>}, {pipeline_mode = #tpu.pipeline_mode<synchronous>, transform_indices = @transform_18, window_bounds = array<i64: 2, 1, 16>}, {pipeline_mode = #tpu.pipeline_mode<synchronous>, transform_indices = @transform_19, window_bounds = array<i64: 2, 128, 128>}, {pipeline_mode = #tpu.pipeline_mode<synchronous>, transform_indices = @transform_20, window_bounds = array<i64: 2, 16, 128>}, {pipeline_mode = #tpu.pipeline_mode<synchronous>, transform_indices = @transform_21, window_bounds = array<i64: 2, 1, 128>}, {pipeline_mode = #tpu.pipeline_mode<synchronous>, transform_indices = @transform_22, window_bounds = array<i64: 2, 128, 128>}, {pipeline_mode = #tpu.pipeline_mode<synchronous>, transform_indices = @transform_23, window_bounds = array<i64: 2, 1, 128>}, {transform_indices = @transform_24, window_bounds = array<i64: 1, 2, 272>}]} {
    %c0 = arith.constant 0 : index
    %c0_0 = arith.constant 0 : index
    %0 = vector.load %arg1[%c0, %c0_0] : memref<64x3xf32, #tpu.memory_space<vmem>>, vector<64x3xf32>
    %c0_1 = arith.constant 0 : index
    %c0_2 = arith.constant 0 : index
    %c0_3 = arith.constant 0 : index
    %1 = vector.load %arg2[%c0_1, %c0_2, %c0_3] : memref<1x2x64xf32, #tpu.memory_space<vmem>>, vector<1x2x64xf32>
    %2 = vector.shape_cast %1 : vector<1x2x64xf32> to vector<2x64xf32>
    %c0_4 = arith.constant 0 : index
    %c0_5 = arith.constant 0 : index
    %c0_6 = arith.constant 0 : index
    %3 = vector.load %arg3[%c0_4, %c0_5, %c0_6] : memref<1x2x1xf32, #tpu.memory_space<vmem>>, vector<1x2x1xf32>
    %4 = vector.shape_cast %3 : vector<1x2x1xf32> to vector<2x1xf32>
    %c0_7 = arith.constant 0 : index
    %c0_8 = arith.constant 0 : index
    %5 = vector.load %arg4[%c0_7, %c0_8] : memref<64x2xf32, #tpu.memory_space<vmem>>, vector<64x2xf32>
    %c0_9 = arith.constant 0 : index
    %c0_10 = arith.constant 0 : index
    %6 = vector.load %arg5[%c0_9, %c0_10] : memref<3x128xf32, #tpu.memory_space<vmem>>, vector<3x128xf32>
    %cst = arith.constant dense<0.000000e+00> : vector<64x128xf32>
    %7 = tpu.matmul %0, %6, %cst {dimension_numbers = #tpu.dot_dimension_numbers<[1], [0], [0], [1], [0, 0, 1, 1], [], []>} : vector<64x3xf32>, vector<3x128xf32>, vector<64x128xf32> -> vector<64x128xf32>
    %c0_11 = arith.constant 0 : index
    %c0_12 = arith.constant 0 : index
    %8 = vector.load %arg6[%c0_11, %c0_12] : memref<1x128xf32, #tpu.memory_space<vmem>>, vector<1x128xf32>
    %9 = vector.broadcast %8 : vector<1x128xf32> to vector<64x128xf32>
    %10 = arith.addf %7, %9 : vector<64x128xf32>
    %cst_13 = arith.constant 0.000000e+00 : f32
    %11 = vector.broadcast %cst_13 : f32 to vector<64x128xf32>
    %12 = arith.cmpf ogt, %10, %11 : vector<64x128xf32>
    %cst_14 = arith.constant 0.00999999977 : f32
    %13 = vector.broadcast %cst_14 : f32 to vector<64x128xf32>
    %14 = arith.mulf %13, %10 : vector<64x128xf32>
    %15 = arith.select %12, %10, %14 : vector<64x128xi1>, vector<64x128xf32>
    %c0_15 = arith.constant 0 : index
    %c0_16 = arith.constant 0 : index
    %16 = vector.load %arg7[%c0_15, %c0_16] : memref<128x128xf32, #tpu.memory_space<vmem>>, vector<128x128xf32>
    %cst_17 = arith.constant dense<0.000000e+00> : vector<64x128xf32>
    %17 = tpu.matmul %15, %16, %cst_17 {dimension_numbers = #tpu.dot_dimension_numbers<[1], [0], [0], [1], [0, 0, 1, 1], [], []>} : vector<64x128xf32>, vector<128x128xf32>, vector<64x128xf32> -> vector<64x128xf32>
    %c0_18 = arith.constant 0 : index
    %c0_19 = arith.constant 0 : index
    %18 = vector.load %arg8[%c0_18, %c0_19] : memref<1x128xf32, #tpu.memory_space<vmem>>, vector<1x128xf32>
    %19 = vector.broadcast %18 : vector<1x128xf32> to vector<64x128xf32>
    %20 = arith.addf %17, %19 : vector<64x128xf32>
    %21 = arith.addf %20, %15 : vector<64x128xf32>
    %cst_20 = arith.constant 0.000000e+00 : f32
    %22 = vector.broadcast %cst_20 : f32 to vector<64x128xf32>
    %23 = arith.cmpf ogt, %21, %22 : vector<64x128xf32>
    %cst_21 = arith.constant 0.00999999977 : f32
    %24 = vector.broadcast %cst_21 : f32 to vector<64x128xf32>
    %25 = arith.mulf %24, %21 : vector<64x128xf32>
    %26 = arith.select %23, %21, %25 : vector<64x128xi1>, vector<64x128xf32>
    %cst_22 = arith.constant dense<0.000000e+00> : vector<2x128xf32>
    %27 = tpu.matmul %2, %26, %cst_22 {dimension_numbers = #tpu.dot_dimension_numbers<[1], [0], [0], [1], [0, 0, 1, 1], [], []>} : vector<2x64xf32>, vector<64x128xf32>, vector<2x128xf32> -> vector<2x128xf32>
    %28 = vector.broadcast %4 : vector<2x1xf32> to vector<2x128xf32>
    %29 = arith.mulf %27, %28 : vector<2x128xf32>
    %cst_23 = arith.constant 0.00999999977 : f32
    %30 = vector.broadcast %cst_23 : f32 to vector<2x128xf32>
    %31 = arith.mulf %27, %30 : vector<2x128xf32>
    %c0_24 = arith.constant 0 : index
    %c0_25 = arith.constant 0 : index
    %32 = vector.load %arg9[%c0_24, %c0_25] : memref<128x128xf32, #tpu.memory_space<vmem>>, vector<128x128xf32>
    %cst_26 = arith.constant dense<0.000000e+00> : vector<2x128xf32>
    %33 = tpu.matmul %31, %32, %cst_26 {dimension_numbers = #tpu.dot_dimension_numbers<[1], [0], [0], [1], [0, 0, 1, 1], [], []>} : vector<2x128xf32>, vector<128x128xf32>, vector<2x128xf32> -> vector<2x128xf32>
    %c0_27 = arith.constant 0 : index
    %c0_28 = arith.constant 0 : index
    %34 = vector.load %arg10[%c0_27, %c0_28] : memref<128x128xf32, #tpu.memory_space<vmem>>, vector<128x128xf32>
    %cst_29 = arith.constant dense<0.000000e+00> : vector<2x128xf32>
    %35 = tpu.matmul %29, %34, %cst_29 {dimension_numbers = #tpu.dot_dimension_numbers<[1], [0], [0], [1], [0, 0, 1, 1], [], []>} : vector<2x128xf32>, vector<128x128xf32>, vector<2x128xf32> -> vector<2x128xf32>
    %36 = arith.addf %33, %35 : vector<2x128xf32>
    %c0_30 = arith.constant 0 : index
    %c0_31 = arith.constant 0 : index
    %37 = vector.load %arg11[%c0_30, %c0_31] : memref<1x128xf32, #tpu.memory_space<vmem>>, vector<1x128xf32>
    %38 = vector.broadcast %37 : vector<1x128xf32> to vector<2x128xf32>
    %39 = arith.addf %36, %38 : vector<2x128xf32>
    %cst_32 = arith.constant 0.000000e+00 : f32
    %40 = vector.broadcast %cst_32 : f32 to vector<2x128xf32>
    %41 = arith.cmpf ogt, %39, %40 : vector<2x128xf32>
    %cst_33 = arith.constant 0.00999999977 : f32
    %42 = vector.broadcast %cst_33 : f32 to vector<2x128xf32>
    %43 = arith.mulf %42, %39 : vector<2x128xf32>
    %44 = arith.select %41, %39, %43 : vector<2x128xi1>, vector<2x128xf32>
    %c0_34 = arith.constant 0 : index
    %c0_35 = arith.constant 0 : index
    %45 = vector.load %arg12[%c0_34, %c0_35] : memref<128x16xf32, #tpu.memory_space<vmem>>, vector<128x16xf32>
    %cst_36 = arith.constant dense<0.000000e+00> : vector<2x16xf32>
    %46 = tpu.matmul %44, %45, %cst_36 {dimension_numbers = #tpu.dot_dimension_numbers<[1], [0], [0], [1], [0, 0, 1, 1], [], []>} : vector<2x128xf32>, vector<128x16xf32>, vector<2x16xf32> -> vector<2x16xf32>
    %c0_37 = arith.constant 0 : index
    %c0_38 = arith.constant 0 : index
    %47 = vector.load %arg13[%c0_37, %c0_38] : memref<1x16xf32, #tpu.memory_space<vmem>>, vector<1x16xf32>
    %48 = vector.broadcast %47 : vector<1x16xf32> to vector<2x16xf32>
    %49 = arith.addf %46, %48 : vector<2x16xf32>
    %cst_39 = arith.constant 0.000000e+00 : f32
    %50 = vector.broadcast %cst_39 : f32 to vector<2x16xf32>
    %51 = arith.cmpf ogt, %49, %50 : vector<2x16xf32>
    %cst_40 = arith.constant 0.00999999977 : f32
    %52 = vector.broadcast %cst_40 : f32 to vector<2x16xf32>
    %53 = arith.mulf %52, %49 : vector<2x16xf32>
    %54 = arith.select %51, %49, %53 : vector<2x16xi1>, vector<2x16xf32>
    %cst_41 = arith.constant dense<0.000000e+00> : vector<2x128xf32>
    %55 = tpu.matmul %2, %26, %cst_41 {dimension_numbers = #tpu.dot_dimension_numbers<[1], [0], [0], [1], [0, 0, 1, 1], [], []>} : vector<2x64xf32>, vector<64x128xf32>, vector<2x128xf32> -> vector<2x128xf32>
    %56 = vector.broadcast %4 : vector<2x1xf32> to vector<2x128xf32>
    %57 = arith.mulf %55, %56 : vector<2x128xf32>
    %cst_42 = arith.constant 0.00999999977 : f32
    %58 = vector.broadcast %cst_42 : f32 to vector<2x128xf32>
    %59 = arith.mulf %55, %58 : vector<2x128xf32>
    %c0_43 = arith.constant 0 : index
    %c0_44 = arith.constant 0 : index
    %c0_45 = arith.constant 0 : index
    %60 = vector.load %arg14[%c0_43, %c0_44, %c0_45] : memref<2x128x128xf32, #tpu.memory_space<vmem>>, vector<1x128x128xf32>
    %61 = vector.shape_cast %60 : vector<1x128x128xf32> to vector<128x128xf32>
    %cst_46 = arith.constant dense<0.000000e+00> : vector<2x128xf32>
    %62 = tpu.matmul %57, %61, %cst_46 {dimension_numbers = #tpu.dot_dimension_numbers<[1], [0], [0], [1], [0, 0, 1, 1], [], []>} : vector<2x128xf32>, vector<128x128xf32>, vector<2x128xf32> -> vector<2x128xf32>
    %c0_47 = arith.constant 0 : index
    %c0_48 = arith.constant 0 : index
    %c0_49 = arith.constant 0 : index
    %63 = vector.load %arg15[%c0_47, %c0_48, %c0_49] : memref<2x128x128xf32, #tpu.memory_space<vmem>>, vector<1x128x128xf32>
    %64 = vector.shape_cast %63 : vector<1x128x128xf32> to vector<128x128xf32>
    %cst_50 = arith.constant dense<0.000000e+00> : vector<2x128xf32>
    %65 = tpu.matmul %59, %64, %cst_50 {dimension_numbers = #tpu.dot_dimension_numbers<[1], [0], [0], [1], [0, 0, 1, 1], [], []>} : vector<2x128xf32>, vector<128x128xf32>, vector<2x128xf32> -> vector<2x128xf32>
    %66 = arith.addf %62, %65 : vector<2x128xf32>
    %c0_51 = arith.constant 0 : index
    %c0_52 = arith.constant 0 : index
    %c0_53 = arith.constant 0 : index
    %67 = vector.load %arg16[%c0_51, %c0_52, %c0_53] : memref<2x16x128xf32, #tpu.memory_space<vmem>>, vector<1x16x128xf32>
    %68 = vector.shape_cast %67 : vector<1x16x128xf32> to vector<16x128xf32>
    %cst_54 = arith.constant dense<0.000000e+00> : vector<2x128xf32>
    %69 = tpu.matmul %54, %68, %cst_54 {dimension_numbers = #tpu.dot_dimension_numbers<[1], [0], [0], [1], [0, 0, 1, 1], [], []>} : vector<2x16xf32>, vector<16x128xf32>, vector<2x128xf32> -> vector<2x128xf32>
    %70 = arith.addf %66, %69 : vector<2x128xf32>
    %c0_55 = arith.constant 0 : index
    %c0_56 = arith.constant 0 : index
    %c0_57 = arith.constant 0 : index
    %71 = vector.load %arg17[%c0_55, %c0_56, %c0_57] : memref<2x1x128xf32, #tpu.memory_space<vmem>>, vector<1x1x128xf32>
    %72 = vector.shape_cast %71 : vector<1x1x128xf32> to vector<1x128xf32>
    %73 = vector.broadcast %72 : vector<1x128xf32> to vector<2x128xf32>
    %74 = arith.addf %70, %73 : vector<2x128xf32>
    %cst_58 = arith.constant 0.000000e+00 : f32
    %75 = vector.broadcast %cst_58 : f32 to vector<2x128xf32>
    %76 = arith.cmpf ogt, %74, %75 : vector<2x128xf32>
    %cst_59 = arith.constant 0.00999999977 : f32
    %77 = vector.broadcast %cst_59 : f32 to vector<2x128xf32>
    %78 = arith.mulf %77, %74 : vector<2x128xf32>
    %79 = arith.select %76, %74, %78 : vector<2x128xi1>, vector<2x128xf32>
    %c0_60 = arith.constant 0 : index
    %c0_61 = arith.constant 0 : index
    %c0_62 = arith.constant 0 : index
    %80 = vector.load %arg18[%c0_60, %c0_61, %c0_62] : memref<2x128x16xf32, #tpu.memory_space<vmem>>, vector<1x128x16xf32>
    %81 = vector.shape_cast %80 : vector<1x128x16xf32> to vector<128x16xf32>
    %cst_63 = arith.constant dense<0.000000e+00> : vector<2x16xf32>
    %82 = tpu.matmul %79, %81, %cst_63 {dimension_numbers = #tpu.dot_dimension_numbers<[1], [0], [0], [1], [0, 0, 1, 1], [], []>} : vector<2x128xf32>, vector<128x16xf32>, vector<2x16xf32> -> vector<2x16xf32>
    %c0_64 = arith.constant 0 : index
    %c0_65 = arith.constant 0 : index
    %c0_66 = arith.constant 0 : index
    %83 = vector.load %arg19[%c0_64, %c0_65, %c0_66] : memref<2x1x16xf32, #tpu.memory_space<vmem>>, vector<1x1x16xf32>
    %84 = vector.shape_cast %83 : vector<1x1x16xf32> to vector<1x16xf32>
    %85 = vector.broadcast %84 : vector<1x16xf32> to vector<2x16xf32>
    %86 = arith.addf %82, %85 : vector<2x16xf32>
    %87 = arith.addf %86, %54 : vector<2x16xf32>
    %cst_67 = arith.constant 0.000000e+00 : f32
    %88 = vector.broadcast %cst_67 : f32 to vector<2x16xf32>
    %89 = arith.cmpf ogt, %87, %88 : vector<2x16xf32>
    %cst_68 = arith.constant 0.00999999977 : f32
    %90 = vector.broadcast %cst_68 : f32 to vector<2x16xf32>
    %91 = arith.mulf %90, %87 : vector<2x16xf32>
    %92 = arith.select %89, %87, %91 : vector<2x16xi1>, vector<2x16xf32>
    %c0_69 = arith.constant 0 : index
    %c0_70 = arith.constant 0 : index
    %c0_71 = arith.constant 0 : index
    %93 = vector.load %arg21[%c0_69, %c0_70, %c0_71] : memref<2x16x128xf32, #tpu.memory_space<vmem>>, vector<1x16x128xf32>
    %94 = vector.shape_cast %93 : vector<1x16x128xf32> to vector<16x128xf32>
    %cst_72 = arith.constant dense<0.000000e+00> : vector<2x128xf32>
    %95 = tpu.matmul %92, %94, %cst_72 {dimension_numbers = #tpu.dot_dimension_numbers<[1], [0], [0], [1], [0, 0, 1, 1], [], []>} : vector<2x16xf32>, vector<16x128xf32>, vector<2x128xf32> -> vector<2x128xf32>
    %cst_73 = arith.constant dense<0.000000e+00> : vector<64x128xf32>
    %96 = tpu.matmul %5, %95, %cst_73 {dimension_numbers = #tpu.dot_dimension_numbers<[1], [0], [0], [1], [0, 0, 1, 1], [], []>} : vector<64x2xf32>, vector<2x128xf32>, vector<64x128xf32> -> vector<64x128xf32>
    %c0_74 = arith.constant 0 : index
    %c0_75 = arith.constant 0 : index
    %c0_76 = arith.constant 0 : index
    %97 = vector.load %arg20[%c0_74, %c0_75, %c0_76] : memref<2x128x128xf32, #tpu.memory_space<vmem>>, vector<1x128x128xf32>
    %98 = vector.shape_cast %97 : vector<1x128x128xf32> to vector<128x128xf32>
    %cst_77 = arith.constant dense<0.000000e+00> : vector<64x128xf32>
    %99 = tpu.matmul %26, %98, %cst_77 {dimension_numbers = #tpu.dot_dimension_numbers<[1], [0], [0], [1], [0, 0, 1, 1], [], []>} : vector<64x128xf32>, vector<128x128xf32>, vector<64x128xf32> -> vector<64x128xf32>
    %100 = arith.addf %99, %96 : vector<64x128xf32>
    %c0_78 = arith.constant 0 : index
    %c0_79 = arith.constant 0 : index
    %c0_80 = arith.constant 0 : index
    %101 = vector.load %arg22[%c0_78, %c0_79, %c0_80] : memref<2x1x128xf32, #tpu.memory_space<vmem>>, vector<1x1x128xf32>
    %102 = vector.shape_cast %101 : vector<1x1x128xf32> to vector<1x128xf32>
    %103 = vector.broadcast %102 : vector<1x128xf32> to vector<64x128xf32>
    %104 = arith.addf %100, %103 : vector<64x128xf32>
    %cst_81 = arith.constant 0.000000e+00 : f32
    %105 = vector.broadcast %cst_81 : f32 to vector<64x128xf32>
    %106 = arith.cmpf ogt, %104, %105 : vector<64x128xf32>
    %cst_82 = arith.constant 0.00999999977 : f32
    %107 = vector.broadcast %cst_82 : f32 to vector<64x128xf32>
    %108 = arith.mulf %107, %104 : vector<64x128xf32>
    %109 = arith.select %106, %104, %108 : vector<64x128xi1>, vector<64x128xf32>
    %c0_83 = arith.constant 0 : index
    %c0_84 = arith.constant 0 : index
    %c0_85 = arith.constant 0 : index
    %110 = vector.load %arg23[%c0_83, %c0_84, %c0_85] : memref<2x128x128xf32, #tpu.memory_space<vmem>>, vector<1x128x128xf32>
    %111 = vector.shape_cast %110 : vector<1x128x128xf32> to vector<128x128xf32>
    %cst_86 = arith.constant dense<0.000000e+00> : vector<64x128xf32>
    %112 = tpu.matmul %109, %111, %cst_86 {dimension_numbers = #tpu.dot_dimension_numbers<[1], [0], [0], [1], [0, 0, 1, 1], [], []>} : vector<64x128xf32>, vector<128x128xf32>, vector<64x128xf32> -> vector<64x128xf32>
    %c0_87 = arith.constant 0 : index
    %c0_88 = arith.constant 0 : index
    %c0_89 = arith.constant 0 : index
    %113 = vector.load %arg24[%c0_87, %c0_88, %c0_89] : memref<2x1x128xf32, #tpu.memory_space<vmem>>, vector<1x1x128xf32>
    %114 = vector.shape_cast %113 : vector<1x1x128xf32> to vector<1x128xf32>
    %115 = vector.broadcast %114 : vector<1x128xf32> to vector<64x128xf32>
    %116 = arith.addf %112, %115 : vector<64x128xf32>
    %117 = arith.addf %116, %26 : vector<64x128xf32>
    %cst_90 = arith.constant 0.000000e+00 : f32
    %118 = vector.broadcast %cst_90 : f32 to vector<64x128xf32>
    %119 = arith.cmpf ogt, %117, %118 : vector<64x128xf32>
    %cst_91 = arith.constant 0.00999999977 : f32
    %120 = vector.broadcast %cst_91 : f32 to vector<64x128xf32>
    %121 = arith.mulf %120, %117 : vector<64x128xf32>
    %122 = arith.select %119, %117, %121 : vector<64x128xi1>, vector<64x128xf32>
    %cst_92 = arith.constant dense<0.000000e+00> : vector<2x128xf32>
    %123 = tpu.matmul %2, %122, %cst_92 {dimension_numbers = #tpu.dot_dimension_numbers<[1], [0], [0], [1], [0, 0, 1, 1], [], []>} : vector<2x64xf32>, vector<64x128xf32>, vector<2x128xf32> -> vector<2x128xf32>
    %124 = vector.broadcast %4 : vector<2x1xf32> to vector<2x128xf32>
    %125 = arith.mulf %123, %124 : vector<2x128xf32>
    %cst_93 = arith.constant 0.00999999977 : f32
    %126 = vector.broadcast %cst_93 : f32 to vector<2x128xf32>
    %127 = arith.mulf %123, %126 : vector<2x128xf32>
    %c1 = arith.constant 1 : index
    %c0_94 = arith.constant 0 : index
    %c0_95 = arith.constant 0 : index
    %128 = vector.load %arg14[%c1, %c0_94, %c0_95] : memref<2x128x128xf32, #tpu.memory_space<vmem>>, vector<1x128x128xf32>
    %129 = vector.shape_cast %128 : vector<1x128x128xf32> to vector<128x128xf32>
    %cst_96 = arith.constant dense<0.000000e+00> : vector<2x128xf32>
    %130 = tpu.matmul %125, %129, %cst_96 {dimension_numbers = #tpu.dot_dimension_numbers<[1], [0], [0], [1], [0, 0, 1, 1], [], []>} : vector<2x128xf32>, vector<128x128xf32>, vector<2x128xf32> -> vector<2x128xf32>
    %c1_97 = arith.constant 1 : index
    %c0_98 = arith.constant 0 : index
    %c0_99 = arith.constant 0 : index
    %131 = vector.load %arg15[%c1_97, %c0_98, %c0_99] : memref<2x128x128xf32, #tpu.memory_space<vmem>>, vector<1x128x128xf32>
    %132 = vector.shape_cast %131 : vector<1x128x128xf32> to vector<128x128xf32>
    %cst_100 = arith.constant dense<0.000000e+00> : vector<2x128xf32>
    %133 = tpu.matmul %127, %132, %cst_100 {dimension_numbers = #tpu.dot_dimension_numbers<[1], [0], [0], [1], [0, 0, 1, 1], [], []>} : vector<2x128xf32>, vector<128x128xf32>, vector<2x128xf32> -> vector<2x128xf32>
    %134 = arith.addf %130, %133 : vector<2x128xf32>
    %c1_101 = arith.constant 1 : index
    %c0_102 = arith.constant 0 : index
    %c0_103 = arith.constant 0 : index
    %135 = vector.load %arg16[%c1_101, %c0_102, %c0_103] : memref<2x16x128xf32, #tpu.memory_space<vmem>>, vector<1x16x128xf32>
    %136 = vector.shape_cast %135 : vector<1x16x128xf32> to vector<16x128xf32>
    %cst_104 = arith.constant dense<0.000000e+00> : vector<2x128xf32>
    %137 = tpu.matmul %92, %136, %cst_104 {dimension_numbers = #tpu.dot_dimension_numbers<[1], [0], [0], [1], [0, 0, 1, 1], [], []>} : vector<2x16xf32>, vector<16x128xf32>, vector<2x128xf32> -> vector<2x128xf32>
    %138 = arith.addf %134, %137 : vector<2x128xf32>
    %c1_105 = arith.constant 1 : index
    %c0_106 = arith.constant 0 : index
    %c0_107 = arith.constant 0 : index
    %139 = vector.load %arg17[%c1_105, %c0_106, %c0_107] : memref<2x1x128xf32, #tpu.memory_space<vmem>>, vector<1x1x128xf32>
    %140 = vector.shape_cast %139 : vector<1x1x128xf32> to vector<1x128xf32>
    %141 = vector.broadcast %140 : vector<1x128xf32> to vector<2x128xf32>
    %142 = arith.addf %138, %141 : vector<2x128xf32>
    %cst_108 = arith.constant 0.000000e+00 : f32
    %143 = vector.broadcast %cst_108 : f32 to vector<2x128xf32>
    %144 = arith.cmpf ogt, %142, %143 : vector<2x128xf32>
    %cst_109 = arith.constant 0.00999999977 : f32
    %145 = vector.broadcast %cst_109 : f32 to vector<2x128xf32>
    %146 = arith.mulf %145, %142 : vector<2x128xf32>
    %147 = arith.select %144, %142, %146 : vector<2x128xi1>, vector<2x128xf32>
    %c1_110 = arith.constant 1 : index
    %c0_111 = arith.constant 0 : index
    %c0_112 = arith.constant 0 : index
    %148 = vector.load %arg18[%c1_110, %c0_111, %c0_112] : memref<2x128x16xf32, #tpu.memory_space<vmem>>, vector<1x128x16xf32>
    %149 = vector.shape_cast %148 : vector<1x128x16xf32> to vector<128x16xf32>
    %cst_113 = arith.constant dense<0.000000e+00> : vector<2x16xf32>
    %150 = tpu.matmul %147, %149, %cst_113 {dimension_numbers = #tpu.dot_dimension_numbers<[1], [0], [0], [1], [0, 0, 1, 1], [], []>} : vector<2x128xf32>, vector<128x16xf32>, vector<2x16xf32> -> vector<2x16xf32>
    %c1_114 = arith.constant 1 : index
    %c0_115 = arith.constant 0 : index
    %c0_116 = arith.constant 0 : index
    %151 = vector.load %arg19[%c1_114, %c0_115, %c0_116] : memref<2x1x16xf32, #tpu.memory_space<vmem>>, vector<1x1x16xf32>
    %152 = vector.shape_cast %151 : vector<1x1x16xf32> to vector<1x16xf32>
    %153 = vector.broadcast %152 : vector<1x16xf32> to vector<2x16xf32>
    %154 = arith.addf %150, %153 : vector<2x16xf32>
    %155 = arith.addf %154, %92 : vector<2x16xf32>
    %cst_117 = arith.constant 0.000000e+00 : f32
    %156 = vector.broadcast %cst_117 : f32 to vector<2x16xf32>
    %157 = arith.cmpf ogt, %155, %156 : vector<2x16xf32>
    %cst_118 = arith.constant 0.00999999977 : f32
    %158 = vector.broadcast %cst_118 : f32 to vector<2x16xf32>
    %159 = arith.mulf %158, %155 : vector<2x16xf32>
    %160 = arith.select %157, %155, %159 : vector<2x16xi1>, vector<2x16xf32>
    %c1_119 = arith.constant 1 : index
    %c0_120 = arith.constant 0 : index
    %c0_121 = arith.constant 0 : index
    %161 = vector.load %arg21[%c1_119, %c0_120, %c0_121] : memref<2x16x128xf32, #tpu.memory_space<vmem>>, vector<1x16x128xf32>
    %162 = vector.shape_cast %161 : vector<1x16x128xf32> to vector<16x128xf32>
    %cst_122 = arith.constant dense<0.000000e+00> : vector<2x128xf32>
    %163 = tpu.matmul %160, %162, %cst_122 {dimension_numbers = #tpu.dot_dimension_numbers<[1], [0], [0], [1], [0, 0, 1, 1], [], []>} : vector<2x16xf32>, vector<16x128xf32>, vector<2x128xf32> -> vector<2x128xf32>
    %cst_123 = arith.constant dense<0.000000e+00> : vector<64x128xf32>
    %164 = tpu.matmul %5, %163, %cst_123 {dimension_numbers = #tpu.dot_dimension_numbers<[1], [0], [0], [1], [0, 0, 1, 1], [], []>} : vector<64x2xf32>, vector<2x128xf32>, vector<64x128xf32> -> vector<64x128xf32>
    %c1_124 = arith.constant 1 : index
    %c0_125 = arith.constant 0 : index
    %c0_126 = arith.constant 0 : index
    %165 = vector.load %arg20[%c1_124, %c0_125, %c0_126] : memref<2x128x128xf32, #tpu.memory_space<vmem>>, vector<1x128x128xf32>
    %166 = vector.shape_cast %165 : vector<1x128x128xf32> to vector<128x128xf32>
    %cst_127 = arith.constant dense<0.000000e+00> : vector<64x128xf32>
    %167 = tpu.matmul %122, %166, %cst_127 {dimension_numbers = #tpu.dot_dimension_numbers<[1], [0], [0], [1], [0, 0, 1, 1], [], []>} : vector<64x128xf32>, vector<128x128xf32>, vector<64x128xf32> -> vector<64x128xf32>
    %168 = arith.addf %167, %164 : vector<64x128xf32>
    %c1_128 = arith.constant 1 : index
    %c0_129 = arith.constant 0 : index
    %c0_130 = arith.constant 0 : index
    %169 = vector.load %arg22[%c1_128, %c0_129, %c0_130] : memref<2x1x128xf32, #tpu.memory_space<vmem>>, vector<1x1x128xf32>
    %170 = vector.shape_cast %169 : vector<1x1x128xf32> to vector<1x128xf32>
    %171 = vector.broadcast %170 : vector<1x128xf32> to vector<64x128xf32>
    %172 = arith.addf %168, %171 : vector<64x128xf32>
    %cst_131 = arith.constant 0.000000e+00 : f32
    %173 = vector.broadcast %cst_131 : f32 to vector<64x128xf32>
    %174 = arith.cmpf ogt, %172, %173 : vector<64x128xf32>
    %cst_132 = arith.constant 0.00999999977 : f32
    %175 = vector.broadcast %cst_132 : f32 to vector<64x128xf32>
    %176 = arith.mulf %175, %172 : vector<64x128xf32>
    %177 = arith.select %174, %172, %176 : vector<64x128xi1>, vector<64x128xf32>
    %c1_133 = arith.constant 1 : index
    %c0_134 = arith.constant 0 : index
    %c0_135 = arith.constant 0 : index
    %178 = vector.load %arg23[%c1_133, %c0_134, %c0_135] : memref<2x128x128xf32, #tpu.memory_space<vmem>>, vector<1x128x128xf32>
    %179 = vector.shape_cast %178 : vector<1x128x128xf32> to vector<128x128xf32>
    %cst_136 = arith.constant dense<0.000000e+00> : vector<64x128xf32>
    %180 = tpu.matmul %177, %179, %cst_136 {dimension_numbers = #tpu.dot_dimension_numbers<[1], [0], [0], [1], [0, 0, 1, 1], [], []>} : vector<64x128xf32>, vector<128x128xf32>, vector<64x128xf32> -> vector<64x128xf32>
    %c1_137 = arith.constant 1 : index
    %c0_138 = arith.constant 0 : index
    %c0_139 = arith.constant 0 : index
    %181 = vector.load %arg24[%c1_137, %c0_138, %c0_139] : memref<2x1x128xf32, #tpu.memory_space<vmem>>, vector<1x1x128xf32>
    %182 = vector.shape_cast %181 : vector<1x1x128xf32> to vector<1x128xf32>
    %183 = vector.broadcast %182 : vector<1x128xf32> to vector<64x128xf32>
    %184 = arith.addf %180, %183 : vector<64x128xf32>
    %185 = arith.addf %184, %122 : vector<64x128xf32>
    %cst_140 = arith.constant 0.000000e+00 : f32
    %186 = vector.broadcast %cst_140 : f32 to vector<64x128xf32>
    %187 = arith.cmpf ogt, %185, %186 : vector<64x128xf32>
    %cst_141 = arith.constant 0.00999999977 : f32
    %188 = vector.broadcast %cst_141 : f32 to vector<64x128xf32>
    %189 = arith.mulf %188, %185 : vector<64x128xf32>
    %190 = arith.select %187, %185, %189 : vector<64x128xi1>, vector<64x128xf32>
    %cst_142 = arith.constant dense<0.000000e+00> : vector<2x128xf32>
    %191 = tpu.matmul %2, %190, %cst_142 {dimension_numbers = #tpu.dot_dimension_numbers<[1], [0], [0], [1], [0, 0, 1, 1], [], []>} : vector<2x64xf32>, vector<64x128xf32>, vector<2x128xf32> -> vector<2x128xf32>
    %192 = vector.broadcast %4 : vector<2x1xf32> to vector<2x128xf32>
    %193 = arith.mulf %191, %192 : vector<2x128xf32>
    %cst_143 = arith.constant 0.00999999977 : f32
    %194 = vector.broadcast %cst_143 : f32 to vector<2x128xf32>
    %195 = arith.mulf %191, %194 : vector<2x128xf32>
    %c0_144 = arith.constant 0 : index
    %c0_145 = arith.constant 0 : index
    %c0_146 = arith.constant 0 : index
    %196 = vector.load %arg25[%c0_144, %c0_145, %c0_146] : memref<1x2x272xf32, #tpu.memory_space<vmem>>, vector<1x2x128xf32>
    %197 = vector.shape_cast %196 : vector<1x2x128xf32> to vector<2x128xf32>
    %198 = vector.shape_cast %195 : vector<2x128xf32> to vector<1x2x128xf32>
    tpu.vector_store %arg25[%c0_144, %c0_145, %c0_146], %198 {strides = array<i32>} : memref<1x2x272xf32, #tpu.memory_space<vmem>>, vector<1x2x128xf32>,
    %c0_147 = arith.constant 0 : index
    %c0_148 = arith.constant 0 : index
    %c128 = arith.constant 128 : index
    %199 = vector.load %arg25[%c0_147, %c0_148, %c128] : memref<1x2x272xf32, #tpu.memory_space<vmem>>, vector<1x2x128xf32>
    %200 = vector.shape_cast %199 : vector<1x2x128xf32> to vector<2x128xf32>
    %201 = vector.shape_cast %193 : vector<2x128xf32> to vector<1x2x128xf32>
    tpu.vector_store %arg25[%c0_147, %c0_148, %c128], %201 {strides = array<i32>} : memref<1x2x272xf32, #tpu.memory_space<vmem>>, vector<1x2x128xf32>,
    %c0_149 = arith.constant 0 : index
    %c0_150 = arith.constant 0 : index
    %c256 = arith.constant 256 : index
    %202 = vector.load %arg25[%c0_149, %c0_150, %c256] : memref<1x2x272xf32, #tpu.memory_space<vmem>>, vector<1x2x16xf32>
    %203 = vector.shape_cast %202 : vector<1x2x16xf32> to vector<2x16xf32>
    %204 = vector.shape_cast %160 : vector<2x16xf32> to vector<1x2x16xf32>
    tpu.vector_store %arg25[%c0_149, %c0_150, %c256], %204 {strides = array<i32>} : memref<1x2x272xf32, #tpu.memory_space<vmem>>, vector<1x2x16xf32>,
    return
  }
  func.func @transform_0(%arg0: i32) -> (i32, i32) {
    %c0_i32 = arith.constant 0 : i32
    %c0_i32_0 = arith.constant 0 : i32
    return %arg0, %c0_i32 : i32, i32
  }
  func.func @transform_1(%arg0: i32) -> (i32, i32, i32) {
    %c0_i32 = arith.constant 0 : i32
    %c0_i32_0 = arith.constant 0 : i32
    %c0_i32_1 = arith.constant 0 : i32
    return %arg0, %c0_i32, %c0_i32_0 : i32, i32, i32
  }
  func.func @transform_2(%arg0: i32) -> (i32, i32, i32) {
    %c0_i32 = arith.constant 0 : i32
    %c0_i32_0 = arith.constant 0 : i32
    %c0_i32_1 = arith.constant 0 : i32
    return %arg0, %c0_i32, %c0_i32_0 : i32, i32, i32
  }
  func.func @transform_3(%arg0: i32) -> (i32, i32) {
    %c0_i32 = arith.constant 0 : i32
    %c0_i32_0 = arith.constant 0 : i32
    %c0_i32_1 = arith.constant 0 : i32
    return %c0_i32, %c0_i32_0 : i32, i32
  }
  func.func @transform_4(%arg0: i32) -> (i32, i32) {
    %c0_i32 = arith.constant 0 : i32
    %c0_i32_0 = arith.constant 0 : i32
    %c0_i32_1 = arith.constant 0 : i32
    return %c0_i32, %c0_i32_0 : i32, i32
  }
  func.func @transform_5(%arg0: i32) -> (i32, i32) {
    %c0_i32 = arith.constant 0 : i32
    %c0_i32_0 = arith.constant 0 : i32
    %c0_i32_1 = arith.constant 0 : i32
    return %c0_i32, %c0_i32_0 : i32, i32
  }
  func.func @transform_6(%arg0: i32) -> (i32, i32) {
    %c0_i32 = arith.constant 0 : i32
    %c0_i32_0 = arith.constant 0 : i32
    %c0_i32_1 = arith.constant 0 : i32
    return %c0_i32, %c0_i32_0 : i32, i32
  }
  func.func @transform_7(%arg0: i32) -> (i32, i32) {
    %c0_i32 = arith.constant 0 : i32
    %c0_i32_0 = arith.constant 0 : i32
    %c0_i32_1 = arith.constant 0 : i32
    return %c0_i32, %c0_i32_0 : i32, i32
  }
  func.func @transform_8(%arg0: i32) -> (i32, i32) {
    %c0_i32 = arith.constant 0 : i32
    %c0_i32_0 = arith.constant 0 : i32
    %c0_i32_1 = arith.constant 0 : i32
    return %c0_i32, %c0_i32_0 : i32, i32
  }
  func.func @transform_9(%arg0: i32) -> (i32, i32) {
    %c0_i32 = arith.constant 0 : i32
    %c0_i32_0 = arith.constant 0 : i32
    %c0_i32_1 = arith.constant 0 : i32
    return %c0_i32, %c0_i32_0 : i32, i32
  }
  func.func @transform_10(%arg0: i32) -> (i32, i32) {
    %c0_i32 = arith.constant 0 : i32
    %c0_i32_0 = arith.constant 0 : i32
    %c0_i32_1 = arith.constant 0 : i32
    return %c0_i32, %c0_i32_0 : i32, i32
  }
  func.func @transform_11(%arg0: i32) -> (i32, i32) {
    %c0_i32 = arith.constant 0 : i32
    %c0_i32_0 = arith.constant 0 : i32
    %c0_i32_1 = arith.constant 0 : i32
    return %c0_i32, %c0_i32_0 : i32, i32
  }
  func.func @transform_12(%arg0: i32) -> (i32, i32) {
    %c0_i32 = arith.constant 0 : i32
    %c0_i32_0 = arith.constant 0 : i32
    %c0_i32_1 = arith.constant 0 : i32
    return %c0_i32, %c0_i32_0 : i32, i32
  }
  func.func @transform_13(%arg0: i32) -> (i32, i32, i32) {
    %c0_i32 = arith.constant 0 : i32
    %c0_i32_0 = arith.constant 0 : i32
    %c0_i32_1 = arith.constant 0 : i32
    %c0_i32_2 = arith.constant 0 : i32
    return %c0_i32, %c0_i32_0, %c0_i32_1 : i32, i32, i32
  }
  func.func @transform_14(%arg0: i32) -> (i32, i32, i32) {
    %c0_i32 = arith.constant 0 : i32
    %c0_i32_0 = arith.constant 0 : i32
    %c0_i32_1 = arith.constant 0 : i32
    %c0_i32_2 = arith.constant 0 : i32
    return %c0_i32, %c0_i32_0, %c0_i32_1 : i32, i32, i32
  }
  func.func @transform_15(%arg0: i32) -> (i32, i32, i32) {
    %c0_i32 = arith.constant 0 : i32
    %c0_i32_0 = arith.constant 0 : i32
    %c0_i32_1 = arith.constant 0 : i32
    %c0_i32_2 = arith.constant 0 : i32
    return %c0_i32, %c0_i32_0, %c0_i32_1 : i32, i32, i32
  }
  func.func @transform_16(%arg0: i32) -> (i32, i32, i32) {
    %c0_i32 = arith.constant 0 : i32
    %c0_i32_0 = arith.constant 0 : i32
    %c0_i32_1 = arith.constant 0 : i32
    %c0_i32_2 = arith.constant 0 : i32
    return %c0_i32, %c0_i32_0, %c0_i32_1 : i32, i32, i32
  }
  func.func @transform_17(%arg0: i32) -> (i32, i32, i32) {
    %c0_i32 = arith.constant 0 : i32
    %c0_i32_0 = arith.constant 0 : i32
    %c0_i32_1 = arith.constant 0 : i32
    %c0_i32_2 = arith.constant 0 : i32
    return %c0_i32, %c0_i32_0, %c0_i32_1 : i32, i32, i32
  }
  func.func @transform_18(%arg0: i32) -> (i32, i32, i32) {
    %c0_i32 = arith.constant 0 : i32
    %c0_i32_0 = arith.constant 0 : i32
    %c0_i32_1 = arith.constant 0 : i32
    %c0_i32_2 = arith.constant 0 : i32
    return %c0_i32, %c0_i32_0, %c0_i32_1 : i32, i32, i32
  }
  func.func @transform_19(%arg0: i32) -> (i32, i32, i32) {
    %c0_i32 = arith.constant 0 : i32
    %c0_i32_0 = arith.constant 0 : i32
    %c0_i32_1 = arith.constant 0 : i32
    %c0_i32_2 = arith.constant 0 : i32
    return %c0_i32, %c0_i32_0, %c0_i32_1 : i32, i32, i32
  }
  func.func @transform_20(%arg0: i32) -> (i32, i32, i32) {
    %c0_i32 = arith.constant 0 : i32
    %c0_i32_0 = arith.constant 0 : i32
    %c0_i32_1 = arith.constant 0 : i32
    %c0_i32_2 = arith.constant 0 : i32
    return %c0_i32, %c0_i32_0, %c0_i32_1 : i32, i32, i32
  }
  func.func @transform_21(%arg0: i32) -> (i32, i32, i32) {
    %c0_i32 = arith.constant 0 : i32
    %c0_i32_0 = arith.constant 0 : i32
    %c0_i32_1 = arith.constant 0 : i32
    %c0_i32_2 = arith.constant 0 : i32
    return %c0_i32, %c0_i32_0, %c0_i32_1 : i32, i32, i32
  }
  func.func @transform_22(%arg0: i32) -> (i32, i32, i32) {
    %c0_i32 = arith.constant 0 : i32
    %c0_i32_0 = arith.constant 0 : i32
    %c0_i32_1 = arith.constant 0 : i32
    %c0_i32_2 = arith.constant 0 : i32
    return %c0_i32, %c0_i32_0, %c0_i32_1 : i32, i32, i32
  }
  func.func @transform_23(%arg0: i32) -> (i32, i32, i32) {
    %c0_i32 = arith.constant 0 : i32
    %c0_i32_0 = arith.constant 0 : i32
    %c0_i32_1 = arith.constant 0 : i32
    %c0_i32_2 = arith.constant 0 : i32
    return %c0_i32, %c0_i32_0, %c0_i32_1 : i32, i32, i32
  }
  func.func @transform_24(%arg0: i32) -> (i32, i32, i32) {
    %c0_i32 = arith.constant 0 : i32
    %c0_i32_0 = arith.constant 0 : i32
    %c0_i32_1 = arith.constant 0 : i32
    return %arg0, %c0_i32, %c0_i32_0 : i32, i32, i32
  }
}

</mosaic_0001>

<bundles_post_ra>
// kernel: tpu_custom_call.1
= control target key start
LH: loop header
LB: loop body
LE: loop exit
PB: predicated region body
PF: predicated region fallthrough
CT: control target
= control target key end

     0   :  { %s5650_s0 = inlined_call_operand.vmem [shape: f32[64,3], index: 0, kind: input, shape index: {}]   ;;  %s5651_s1 = inlined_call_operand.vmem [shape: f32[1,2,64], index: 1, kind: input, shape index: {}]   ;;  %s5652_s2 = inlined_call_operand.vmem [shape: f32[1,2,1], index: 2, kind: input, shape index: {}]   ;;  %s5653_s3 = inlined_call_operand.vmem [shape: f32[64,2], index: 3, kind: input, shape index: {}]   ;;  %s5654_s4 = inlined_call_operand.hbm [shape: f32[3,128], index: 4, kind: input, shape index: {}]   ;;  %s5655_s5 = inlined_call_operand.vmem [shape: f32[1,128], index: 5, kind: input, shape index: {}]   ;;  %s5656_s6 = inlined_call_operand.hbm [shape: f32[128,128], index: 6, kind: input, shape index: {}]   ;;  %s5657_s7 = inlined_call_operand.hbm [shape: f32[1,128], index: 7, kind: input, shape index: {}]   ;;  %s5658_s8 = inlined_call_operand.hbm [shape: f32[128,128], index: 8, kind: input, shape index: {}]   ;;  %s5659_s9 = inlined_call_operand.hbm [shape: f32[128,128], index: 9, kind: input, shape index: {}]   ;;  %s5660_s10 = inlined_call_operand.hbm [shape: f32[1,128], index: 10, kind: input, shape index: {}]   ;;  %s5661_s11 = inlined_call_operand.vmem [shape: f32[128,16], index: 11, kind: input, shape index: {}]   ;;  %s5662_s12 = inlined_call_operand.hbm [shape: f32[1,16], index: 12, kind: input, shape index: {}]   ;;  %s5663_s13 = inlined_call_operand.vmem [shape: f32[2,128,128], index: 13, kind: input, shape index: {}]   ;;  %s5664_s14 = inlined_call_operand.vmem [shape: f32[2,128,128], index: 14, kind: input, shape index: {}]   ;;  %s5665_s15 = inlined_call_operand.vmem [shape: f32[2,16,128], index: 15, kind: input, shape index: {}]   ;;  %s5666_s16 = inlined_call_operand.vmem [shape: f32[2,1,128], index: 16, kind: input, shape index: {}]   ;;  %s5667_s17 = inlined_call_operand.vmem [shape: f32[2,128,16], index: 17, kind: input, shape index: {}]   ;;  %s5668_s18 = inlined_call_operand.vmem [shape: f32[2,1,16], index: 18, kind: input, shape index: {}]   ;;  %s5669_s19 = inlined_call_operand.hbm [shape: f32[2,128,128], index: 19, kind: input, shape index: {}]   ;;  %s5670_s20 = inlined_call_operand.vmem [shape: f32[2,16,128], index: 20, kind: input, shape index: {}]   ;;  %s5671_s21 = inlined_call_operand.vmem [shape: f32[2,1,128], index: 21, kind: input, shape index: {}]   ;;  %s5672_s22 = inlined_call_operand.hbm [shape: f32[2,128,128], index: 22, kind: input, shape index: {}]   ;;  %s5673_s23 = inlined_call_operand.vmem [shape: f32[2,1,128], index: 23, kind: input, shape index: {}]   ;;  %s5674_s24 = inlined_call_operand.hbm [shape: f32[1,2,272], index: 24, kind: output, shape index: {}]  }
   0x1   :  { %5685 = sst [smem:[#allocation24_spill]] %s5650_s0 }
   0x2   :  { %5686 = sst [smem:[#allocation25_spill]] %s5651_s1 }
   0x3   :  { %5687 = sst [smem:[#allocation26_spill]] %s5652_s2 }
   0x4   :  { %5688 = sst [smem:[#allocation27_spill]] %s5653_s3 }
   0x5   :  { %5689 = sst [smem:[#allocation28_spill]] %s5654_s4 }
   0x6   :  { %5690 = sst [smem:[#allocation29_spill]] %s5655_s5 }
   0x7   :  { %5691 = sst [smem:[#allocation30_spill]] %s5656_s6 }
   0x8   :  { %5692 = sst [smem:[#allocation31_spill]] %s5657_s7 }
   0x9   :  { %5693 = sst [smem:[#allocation32_spill]] %s5658_s8 }
   0xa   :  { %5694 = sst [smem:[#allocation33_spill]] %s5671_s21 }
   0xb   :  { %5695 = sst [smem:[#allocation34_spill]] %s5673_s23 }
   0xc   :  { %5696 = sst [smem:[#allocation35_spill]] %s5674_s24 }
   0xd   :  { %29 = vsyncpa [#allocation3], 0 }
   0xe   :  { %30 = vsyncpa [#allocation6], 0 }
   0xf   :  { %31 = vsyncpa [#allocation9], 0 }
  0x10   :  { %32 = vsyncpa [#allocation12], 0 }
  0x11   :  { %33 = vsyncpa [#allocation15], 0 }
  0x12   :  { %34 = vsyncpa [#allocation4], 0  ;;  %s4609_s5 = smov [#allocation5]   ;;  %s5697_s6 = sld [smem:[#allocation30_spill]] }
  0x13   :  { %s60_s26 = sshll.u32 %s4609_s5, 4  ;;  %s61_s26 = int_to_ptr.vmem [resolvable:$true] %s60_s26 }
  0x18   :  { %s4377_s2 = scalar_lea.hbm %s5697_s6, 2048 }
  0x19   :  { %p4378_p0 = scmp.ne.s32.totalorder %s5697_s6, %s4377_s2  ;;  %p4381_p1 = scmp.lt.u32.totalorder %s4377_s2, %s5697_s6 }
  0x1b   :  { %p4383_p2 = pnand %p4381_p1, %p4378_p0 }
  0x1d   :  { %4386 = shalt.err (!%p4383_p2)
}
  0x1e   :  { %s4387_s3 = scalar_lea.vmem %s61_s26, 2048  ;;  %p4392_p4 = scmp.lt.s32.totalorder %s61_s26, %s61_s26 }
  0x1f   :  { %p4388_p3 = scmp.ne.s32.totalorder %s61_s26, %s4387_s3  ;;  %p4393_p5 = scmp.lt.s32.totalorder %s4387_s3, %s4387_s3 }
  0x21   :  { %p4394_p6 = por %p4393_p5, %p4392_p4 }
  0x23   :  { %p4395_p7 = pnand %p4394_p6, %p4388_p3 }
  0x25   :  { %4398 = shalt.err (!%p4395_p7)
}
  0x26   :  { %s4610_s25 = smov 128   ;;  %s4611_s8 = smov 8  }
  0x27   :  { %66 = dma.hbm_to_vmem [thread:$0]  %s5697_s6, 2048, %s61_s26, [#allocation6], %s4610_s25, %s4610_s25, %s4611_s8  }
  0x28   :  { %s4612_s5 = smov [#allocation8]   ;;  %s4613_s28 = smov [#allocation11]  }
  0x29   :  { %s82_s27 = sshll.u32 %s4612_s5, 4  ;;  %s107_s2 = sshll.u32 %s4613_s28, 4  ;;  %s83_s27 = int_to_ptr.vmem [resolvable:$true] %s82_s27  ;;  %s108_s2 = int_to_ptr.vmem [resolvable:$true] %s107_s2 }
  0x2a   :  { %s5698_s7 = sld [smem:[#allocation32_spill]] }
  0x30   :  { %s4399_s30 = scalar_lea.hbm %s5698_s7, 2048 }
  0x31   :  { %p4400_p8 = scmp.ne.s32.totalorder %s5698_s7, %s4399_s30  ;;  %p4403_p9 = scmp.lt.u32.totalorder %s4399_s30, %s5698_s7 }
  0x33   :  { %p4405_p10 = pnand %p4403_p9, %p4400_p8 }
  0x35   :  { %4408 = shalt.err (!%p4405_p10)
}
  0x36   :  { %s4409_s26 = scalar_lea.vmem %s83_s27, 2048  ;;  %p4414_p12 = scmp.lt.s32.totalorder %s83_s27, %s83_s27 }
  0x37   :  { %p4410_p11 = scmp.ne.s32.totalorder %s83_s27, %s4409_s26  ;;  %p4415_p13 = scmp.lt.s32.totalorder %s4409_s26, %s4409_s26 }
  0x39   :  { %p4416_p0 = por %p4415_p13, %p4414_p12 }
  0x3b   :  { %p4417_p1 = pnand %p4416_p0, %p4410_p11 }
  0x3d   :  { %4420 = shalt.err (!%p4417_p1)
}
  0x3e   :  { %88 = dma.hbm_to_vmem [thread:$0]  %s5698_s7, 2048, %s83_s27, [#allocation9], %s4610_s25, %s4610_s25, %s4611_s8  }
  0x3f   :  { %s4421_s23 = scalar_lea.hbm %s5660_s10, 16 }
  0x40   :  { %p4422_p2 = scmp.ne.s32.totalorder %s5660_s10, %s4421_s23  ;;  %p4425_p3 = scmp.lt.u32.totalorder %s4421_s23, %s5660_s10 }
  0x42   :  { %p4427_p4 = pnand %p4425_p3, %p4422_p2 }
  0x44   :  { %4430 = shalt.err (!%p4427_p4)
}
  0x45   :  { %s4431_s0 = scalar_lea.vmem %s108_s2, 16  ;;  %s4435_s30 = scalar_lea.vmem %s108_s2, 32 }
  0x46   :  { %p4432_p5 = scmp.ne.s32.totalorder %s108_s2, %s4431_s0  ;;  %p4436_p6 = scmp.lt.s32.totalorder %s108_s2, %s108_s2 }
  0x47   :  { %p4437_p7 = scmp.lt.s32.totalorder %s4435_s30, %s4431_s0 }
  0x49   :  { %p4438_p8 = por %p4437_p7, %p4436_p6 }
  0x4b   :  { %p4439_p9 = pnand %p4438_p8, %p4432_p5 }
  0x4d   :  { %4442 = shalt.err (!%p4439_p9)
}
  0x4e   :  { %110 = dma.hbm_to_vmem [thread:$0]  %s5660_s10, 16, %s108_s2, [#allocation12]  }
  0x4f   :  { %s4614_s3 = smov [#allocation14]   ;;  %s4615_s6 = smov [#allocation2]  }
  0x50   :  { %s140_s26 = sshll.u32 %s4614_s3, 4  ;;  %s49_s4 = sshll.u32 %s4615_s6, 4  ;;  %s141_s26 = int_to_ptr.vmem [resolvable:$true] %s140_s26  ;;  %s50_s4 = int_to_ptr.vmem [resolvable:$true] %s49_s4 }
  0x51   :  { %s4443_s23 = scalar_lea.hbm %s5669_s19, 4096 }
  0x52   :  { %p4444_p10 = scmp.ne.s32.totalorder %s5669_s19, %s4443_s23  ;;  %p4447_p11 = scmp.lt.u32.totalorder %s4443_s23, %s5669_s19 }
  0x54   :  { %p4449_p12 = pnand %p4447_p11, %p4444_p10 }
  0x56   :  { %4452 = shalt.err (!%p4449_p12)
}
  0x57   :  { %s4453_s10 = scalar_lea.vmem %s141_s26, 4096  ;;  %p4458_p0 = scmp.lt.s32.totalorder %s141_s26, %s141_s26 }
  0x58   :  { %p4454_p13 = scmp.ne.s32.totalorder %s141_s26, %s4453_s10  ;;  %p4459_p1 = scmp.lt.s32.totalorder %s4453_s10, %s4453_s10 }
  0x5a   :  { %p4460_p2 = por %p4459_p1, %p4458_p0 }
  0x5c   :  { %p4461_p3 = pnand %p4460_p2, %p4454_p13 }
  0x5e   :  { %4464 = shalt.err (!%p4461_p3)
}
  0x5f   :  { %146 = dma.hbm_to_vmem [thread:$0]  %s5669_s19, 4096, %s141_s26, [#allocation15], %s4610_s25, %s4610_s25, %s4611_s8  }
  0x60   :  { %s5699_s7 = sld [smem:[#allocation28_spill]] }
  0x66   :  { %s4465_s3 = scalar_lea.hbm %s5699_s7, 64 }
  0x67   :  { %p4466_p4 = scmp.ne.s32.totalorder %s5699_s7, %s4465_s3  ;;  %p4469_p5 = scmp.lt.u32.totalorder %s4465_s3, %s5699_s7 }
  0x69   :  { %p4471_p6 = pnand %p4469_p5, %p4466_p4 }
  0x6b   :  { %4474 = shalt.err (!%p4471_p6)
}
  0x6c   :  { %s4475_s1 = scalar_lea.vmem %s50_s4, 64  ;;  %p4480_p8 = scmp.lt.s32.totalorder %s50_s4, %s50_s4 }
  0x6d   :  { %p4476_p7 = scmp.ne.s32.totalorder %s50_s4, %s4475_s1  ;;  %p4481_p9 = scmp.lt.s32.totalorder %s4475_s1, %s4475_s1 }
  0x6f   :  { %p4482_p10 = por %p4481_p9, %p4480_p8 }
  0x71   :  { %p4483_p11 = pnand %p4482_p10, %p4476_p7 }
  0x73   :  { %4486 = shalt.err (!%p4483_p11)
}
  0x74   :  { %52 = dma.hbm_to_vmem [thread:$0]  %s5699_s7, 64, %s50_s4, [#allocation3]  }
  0x75   :  { %s4616_s5 = smov [#allocation7]   ;;  %s4617_s29 = smov [#allocation10]  }
  0x76   :  { %s73_s28 = sshll.u32 %s4616_s5, 4  ;;  %s94_s10 = sshll.u32 %s4617_s29, 4  ;;  %s74_s28 = int_to_ptr.vmem [resolvable:$true] %s73_s28  ;;  %s95_s10 = int_to_ptr.vmem [resolvable:$true] %s94_s10 }
  0x77   :  { %s5700_s30 = sld [smem:[#allocation31_spill]] }
  0x7d   :  { %s4487_s27 = scalar_lea.hbm %s5700_s30, 16 }
  0x7e   :  { %p4488_p12 = scmp.ne.s32.totalorder %s5700_s30, %s4487_s27  ;;  %p4491_p13 = scmp.lt.u32.totalorder %s4487_s27, %s5700_s30 }
  0x80   :  { %p4493_p0 = pnand %p4491_p13, %p4488_p12 }
  0x82   :  { %4496 = shalt.err (!%p4493_p0)
}
  0x83   :  { %s4497_s4 = scalar_lea.vmem %s74_s28, 16  ;;  %s4501_s7 = scalar_lea.vmem %s74_s28, 32 }
  0x84   :  { %p4498_p1 = scmp.ne.s32.totalorder %s74_s28, %s4497_s4  ;;  %p4502_p2 = scmp.lt.s32.totalorder %s74_s28, %s74_s28 }
  0x85   :  { %p4503_p3 = scmp.lt.s32.totalorder %s4501_s7, %s4497_s4 }
  0x87   :  { %p4504_p4 = por %p4503_p3, %p4502_p2 }
  0x89   :  { %p4505_p5 = pnand %p4504_p4, %p4498_p1 }
  0x8b   :  { %4508 = shalt.err (!%p4505_p5)
}
  0x8c   :  { %76 = dma.hbm_to_vmem [thread:$0]  %s5700_s30, 16, %s74_s28, [#allocation6]  }
  0x8d   :  { %s4509_s5 = scalar_lea.hbm %s5659_s9, 2048 }
  0x8e   :  { %p4510_p6 = scmp.ne.s32.totalorder %s5659_s9, %s4509_s5  ;;  %p4513_p7 = scmp.lt.u32.totalorder %s4509_s5, %s5659_s9 }
  0x90   :  { %p4515_p8 = pnand %p4513_p7, %p4510_p6 }
  0x92   :  { %4518 = shalt.err (!%p4515_p8)
}
  0x93   :  { %s4519_s3 = scalar_lea.vmem %s95_s10, 2048  ;;  %p4524_p10 = scmp.lt.s32.totalorder %s95_s10, %s95_s10 }
  0x94   :  { %p4520_p9 = scmp.ne.s32.totalorder %s95_s10, %s4519_s3  ;;  %p4525_p11 = scmp.lt.s32.totalorder %s4519_s3, %s4519_s3 }
  0x96   :  { %p4526_p12 = por %p4525_p11, %p4524_p10 }
  0x98   :  { %p4527_p13 = pnand %p4526_p12, %p4520_p9 }
  0x9a   :  { %4530 = shalt.err (!%p4527_p13)
}
  0x9b   :  { %100 = dma.hbm_to_vmem [thread:$0]  %s5659_s9, 2048, %s95_s10, [#allocation9], %s4610_s25, %s4610_s25, %s4611_s8  }
  0x9c   :  { %s4618_s6 = smov [#allocation13]   ;;  %s4619_s21 = smov [#allocation16]  }
  0x9d   :  { %s119_s24 = sshll.u32 %s4618_s6, 4  ;;  %s156_s4 = sshll.u32 %s4619_s21, 4  ;;  %s120_s24 = int_to_ptr.vmem [resolvable:$true] %s119_s24  ;;  %s157_s4 = int_to_ptr.vmem [resolvable:$true] %s156_s4 }
  0x9e   :  { %s4531_s1 = scalar_lea.hbm %s5662_s12, 16 }
  0x9f   :  { %p4532_p0 = scmp.ne.s32.totalorder %s5662_s12, %s4531_s1  ;;  %p4535_p1 = scmp.lt.u32.totalorder %s4531_s1, %s5662_s12 }
  0xa1   :  { %p4537_p2 = pnand %p4535_p1, %p4532_p0 }
  0xa3   :  { %4540 = shalt.err (!%p4537_p2)
}
  0xa4   :  { %s4541_s9 = scalar_lea.vmem %s120_s24, 16  ;;  %s4545_s10 = scalar_lea.vmem %s120_s24, 32 }
  0xa5   :  { %p4542_p3 = scmp.ne.s32.totalorder %s120_s24, %s4541_s9  ;;  %p4546_p4 = scmp.lt.s32.totalorder %s120_s24, %s120_s24 }
  0xa6   :  { %p4547_p5 = scmp.lt.s32.totalorder %s4545_s10, %s4541_s9 }
  0xa8   :  { %p4548_p6 = por %p4547_p5, %p4546_p4 }
  0xaa   :  { %p4549_p7 = pnand %p4548_p6, %p4542_p3 }
  0xac   :  { %4552 = shalt.err (!%p4549_p7)
}
  0xad   :  { %122 = dma.hbm_to_vmem [thread:$0]  %s5662_s12, 16, %s120_s24, [#allocation12]  }
  0xae   :  { %s4553_s28 = scalar_lea.hbm %s5672_s22, 4096 }
  0xaf   :  { %p4554_p8 = scmp.ne.s32.totalorder %s5672_s22, %s4553_s28  ;;  %p4557_p9 = scmp.lt.u32.totalorder %s4553_s28, %s5672_s22 }
  0xb1   :  { %p4559_p10 = pnand %p4557_p9, %p4554_p8 }
  0xb3   :  { %4562 = shalt.err (!%p4559_p10)
}
  0xb4   :  { %s4563_s23 = scalar_lea.vmem %s157_s4, 4096  ;;  %p4568_p12 = scmp.lt.s32.totalorder %s157_s4, %s157_s4 }
  0xb5   :  { %p4564_p11 = scmp.ne.s32.totalorder %s157_s4, %s4563_s23  ;;  %p4569_p13 = scmp.lt.s32.totalorder %s4563_s23, %s4563_s23 }
  0xb7   :  { %p4570_p0 = por %p4569_p13, %p4568_p12 }
  0xb9   :  { %p4571_p1 = pnand %p4570_p0, %p4564_p11 }
  0xbb   :  { %4574 = shalt.err (!%p4571_p1)
}
  0xbc   :  { %162 = dma.hbm_to_vmem [thread:$0]  %s5672_s22, 4096, %s157_s4, [#allocation15], %s4610_s25, %s4610_s25, %s4611_s8  }
  0xbd   :  { %4597 = dma.done.wait [#allocation3], 64  }
  0xbe   :  { %4598 = vsyncadd [#allocation3], 4294967232 }
  0xbf   :  { %4599 = dma.done.wait [#allocation6], 2064  }
  0xc0   :  { %4600 = vsyncadd [#allocation6], 4294965232 }
  0xc1   :  { %4601 = dma.done.wait [#allocation9], 4096  }
  0xc2   :  { %4602 = vsyncadd [#allocation9], 4294963200 }
  0xc3   :  { %4603 = dma.done.wait [#allocation12], 32  }
  0xc4   :  { %4604 = vsyncadd [#allocation12], 4294967264 }
  0xc5   :  { %4605 = dma.done.wait [#allocation15], 8192  }
  0xc6   :  { %4606 = vsyncadd [#allocation15], 4294959104  ;;  %vm243_vm0 = vcmask 1042432   ;;  %vm218_vm1 = vcmask 23552   ;;  %v210_v0 = vld [vmem:[#allocation2] sm:$0x7] }
  0xc7   :  { %s5701_s26 = sld [smem:[#allocation24_spill]]  ;;  %3257 = vmatprep.subr.msk.mxu0 %vm243_vm0, %v210_v0  ;;  %v376_v4 = vld [vmem:[#allocation5] sm:$0xff]  ;;  %v377_v5 = vld [vmem:[#allocation5 + $0x8] sm:$0xff]  ;;  %v378_v6 = vld [vmem:[#allocation5 + $0x10] sm:$0xff]  ;;  %s5702_s7 = sld [smem:[#allocation29_spill]]  ;;  %vm4621_vm10 = vmmov 0  }
  0xc8   :  { %3258 = vmatpush3.msk.msra.mxu0 %vm243_vm0, %v210_v0  ;;  %v3919_v8 = vpack.c.bf16 %v377_v5, %v376_v4  ;;  %v379_v9 = vld [vmem:[#allocation5 + $0x18] sm:$0xff]  ;;  %v380_v12 = vld [vmem:[#allocation5 + $0x20] sm:$0xff]  ;;  %v381_v13 = vld [vmem:[#allocation5 + $0x28] sm:$0xff]  ;;  %s5703_s24 = sld [smem:[#allocation26_spill]]  ;;  %s5705_s9 = sld [smem:[#allocation27_spill]] }
  0xc9   :  { %v3923_v11 = vpack.c.bf16 %v379_v9, %v378_v6  ;;  %v3927_v15 = vpack.c.bf16 %v381_v13, %v380_v12  ;;  %v382_v17 = vld [vmem:[#allocation5 + $0x30] sm:$0xff]  ;;  %v383_v18 = vld [vmem:[#allocation5 + $0x38] sm:$0xff]  ;;  %v384_v21 = vld [vmem:[#allocation5 + $0x40] sm:$0xff]  ;;  %s5706_s29 = sld [smem:[#allocation33_spill]]  ;;  %s5707_s0 = sld [smem:[#allocation34_spill]] }
  0xca   :  { %3920 = vmatprep.subr.bf16.mxu1 %v3919_v8  ;;  %v3931_v20 = vpack.c.bf16 %v383_v18, %v382_v17  ;;  %v385_v22 = vld [vmem:[#allocation5 + $0x48] sm:$0xff]  ;;  %v386_v24 = vld [vmem:[#allocation5 + $0x50] sm:$0xff]  ;;  %v387_v25 = vld [vmem:[#allocation5 + $0x58] sm:$0xff] }
  0xcb   :  { %3922 = vmatpush3.bf16.msra.mxu1 %v3919_v8  ;;  %v3935_v23 = vpack.c.bf16 %v385_v22, %v384_v21  ;;  %v3939_v26 = vpack.c.bf16 %v387_v25, %v386_v24  ;;  %v388_v27 = vld [vmem:[#allocation5 + $0x60] sm:$0xff]  ;;  %v389_v28 = vld [vmem:[#allocation5 + $0x68] sm:$0xff]  ;;  %v390_v30 = vld [vmem:[#allocation5 + $0x70] sm:$0xff] }
  0xcc   :  { %3924 = vmatprep.subr.bf16.mxu1 %v3923_v11  ;;  %v3943_v29 = vpack.c.bf16 %v389_v28, %v388_v27  ;;  %v391_v31 = vld [vmem:[#allocation5 + $0x78] sm:$0xff]  ;;  %v617_v5 = vld [vmem:[#allocation8] sm:$0xff]  ;;  %v618_v6 = vld [vmem:[#allocation8 + $0x8] sm:$0xff] }
  0xcd   :  { %v192_v1 = vld [vmem:[%s5701_s26] sm:$0xff]  ;;  %v193_v2 = vld [vmem:[%s5701_s26 + $0x8] sm:$0xff]  ;;  %v194_v3 = vld [vmem:[%s5701_s26 + $0x10] sm:$0xff]  ;;  %v3947_v32 = vpack.c.bf16 %v391_v31, %v390_v30  ;;  %v3988_v8 = vpack.c.bf16 %v618_v6, %v617_v5 }
  0xce   :  { %3259 = vmatprep.mubr.msk.f32.mxu0 %vm218_vm1, %v192_v1  ;;  %v195_v7 = vld [vmem:[%s5701_s26 + $0x18] sm:$0xff]  ;;  %v196_v10 = vld [vmem:[%s5701_s26 + $0x20] sm:$0xff]  ;;  %v197_v14 = vld [vmem:[%s5701_s26 + $0x28] sm:$0xff] }
  0xcf   :  { %3260 = vmatmul.mubr.msk.f32.vlgmr.msra.gmra.mrb[0].mxu0 %vm218_vm1, %v193_v2  ;;  %v198_v16 = vld [vmem:[%s5701_s26 + $0x30] sm:$0xff]  ;;  %3926 = vmatpush3.bf16.msra.mxu1 %v3923_v11  ;;  %v199_v19 = vld [vmem:[%s5701_s26 + $0x38] sm:$0xff]  ;;  %v2816_v33 = vld [vmem:[%s5702_s7] ss:$0 sm:$0xff]  ;;  %v4620_v2 = vmov 0.0|0.0   ;;  %s5704_s26 = sld [smem:[#allocation25_spill]] }
  0xd0   :  { %3262 = vmatprep.mubr.msk.f32.mxu0 %vm218_vm1, %v194_v3  ;;  %3928 = vmatprep.subr.bf16.mxu1 %v3927_v15  ;;  %v4622_v3 = vmov 0.0   ;;  %v201_v4 = vld [vmem:[%s5703_s24] sm:$0x3]  ;;  %v619_v9 = vld [vmem:[#allocation8 + $0x10] sm:$0xff]  ;;  %v621_v12 = vld [vmem:[#allocation8 + $0x20] sm:$0xff] }
  0xd1   :  { %3951 = vmatprep.subr.bf16.mxu0 %v4620_v2  ;;  %v622_v13 = vld [vmem:[#allocation8 + $0x28] sm:$0xff]  ;;  %v625_v18 = vld [vmem:[#allocation8 + $0x40] sm:$0xff]  ;;  %v627_v21 = vld [vmem:[#allocation8 + $0x50] sm:$0xff] }
  0xd2   :  { %v628_v22 = vld [vmem:[#allocation8 + $0x58] sm:$0xff]  ;;  %v629_v24 = vld [vmem:[#allocation8 + $0x60] sm:$0xff]  ;;  %v630_v25 = vld [vmem:[#allocation8 + $0x68] sm:$0xff] }
  0xd3   :  { %3263 = vmatmul.mubr.msk.f32.gmra.mrb[2].mxu0 %vm218_vm1, %v195_v7  ;;  %3930 = vmatpush3.bf16.msra.mxu1 %v3927_v15  ;;  %v4623_v7 = vmov 0   ;;  %v623_v15 = vld [vmem:[#allocation8 + $0x30] sm:$0xff]  ;;  %v632_v28 = vld [vmem:[#allocation8 + $0x78] sm:$0xff] }
  0xd4   :  { %3265 = vmatprep.mubr.msk.f32.mxu0 %vm218_vm1, %v196_v10  ;;  %3932 = vmatprep.subr.bf16.mxu1 %v3931_v20  ;;  %v620_v10 = vld [vmem:[#allocation8 + $0x18] sm:$0xff]  ;;  %v631_v27 = vld [vmem:[#allocation8 + $0x70] sm:$0xff] }
  0xd5   :  { %4375 = vset.pattern.permute.xlu0 %v4623_v7  ;;  %v3991_v11 = vpack.c.bf16 %v620_v10, %v619_v9  ;;  %v2826_v30 = vld [vmem:[#allocation7] ss:$0 sm:$0xff] }
  0xd6   :  { %612 = vperm.xlu0 %4375, %v201_v4  }
  0xd7   :  { %3266 = vmatmul.mubr.msk.f32.gmra.mrb[4].mxu0 %vm218_vm1, %v197_v14  ;;  %3934 = vmatpush3.bf16.msra.mxu1 %v3931_v20  ;;  %v3994_v14 = vpack.c.bf16 %v622_v13, %v621_v12 }
  0xd8   :  { %3268 = vmatprep.mubr.msk.f32.mxu0 %vm218_vm1, %v198_v16  ;;  %3936 = vmatprep.subr.bf16.mxu1 %v3935_v23  ;;  %v624_v16 = vld [vmem:[#allocation8 + $0x38] sm:$0xff] }
  0xd9   :  { %v3997_v17 = vpack.c.bf16 %v624_v16, %v623_v15  ;;  %v200_v15 = vld [vmem:[%s5704_s26] sm:$0x3] }
  0xdb   :  { %3269 = vmatmul.mubr.msk.f32.gmra.mrb[6].mxu0 %vm218_vm1, %v199_v19  ;;  %3938 = vmatpush3.bf16.msra.mxu1 %v3935_v23  ;;  %v626_v19 = vld [vmem:[#allocation8 + $0x48] sm:$0xff]  ;;  %v4003_v23 = vpack.c.bf16 %v628_v22, %v627_v21 }
  0xdc   :  { %3940 = vmatprep.subr.bf16.mxu1 %v3939_v26  ;;  %3331 = vmatprep.mubr.msk.f32.mxu0 %vm4621_vm10, %v4622_v3  ;;  %v4000_v20 = vpack.c.bf16 %v626_v19, %v625_v18  ;;  %v636_v18 = vld [vmem:[#allocation10 + $0x18] sm:$0xff]  ;;  %v638_v21 = vld [vmem:[#allocation10 + $0x28] sm:$0xff] }
  0xdf   :  { %3942 = vmatpush3.bf16.msra.mxu1 %v3939_v26  ;;  %v4006_v26 = vpack.c.bf16 %v630_v25, %v629_v24  ;;  %v640_v24 = vld [vmem:[#allocation10 + $0x38] sm:$0xff] }
  0xe0   :  { %3944 = vmatprep.subr.bf16.mxu1 %v3943_v29 }
  0xe3   :  { %3946 = vmatpush3.bf16.msra.mxu1 %v3943_v29  ;;  %v4009_v29 = vpack.c.bf16 %v632_v28, %v631_v27  ;;  %v642_v27 = vld [vmem:[#allocation10 + $0x48] sm:$0xff] }
  0xe4   :  { %3948 = vmatprep.subr.bf16.mxu1 %v3947_v32 }
  0xe7   :  { %3950 = vmatpush3.bf16.msra.mxu1 %v3947_v32 }
  0xe8   :  { %3987 = vmatprep.subr.bf16.mxu1 %v4620_v2 }
 0x1a2   :  { %v3261_v34 = vpop.f32.mrb[0].mxu0 }
 0x1a3   :  { %v319_v35 = vadd.f32 %v3261_v34, %v2816_v33  ;;  %v313_v36 = vpop.f32.mrb[1].mxu0 }
 0x1a4   :  { %v314_v37 = vadd.f32 %v2816_v33, %v313_v36 }
 0x1a5   :  { %v361_v38 = vmul.f32 0.01, %v319_v35  ;;  %vm353_vm3 = vcmp.gt.f32.partialorder %v319_v35, 0.0 }
 0x1a6   :  { %v3264_v39 = vpop.f32.mrb[2].mxu0  ;;  %vm352_vm2 = vcmp.gt.f32.partialorder %v314_v37, 0.0  ;;  %v360_v40 = vmul.f32 0.01, %v314_v37 }
 0x1a7   :  { %v329_v41 = vadd.f32 %v3264_v39, %v2816_v33  ;;  %v323_v42 = vpop.f32.mrb[3].mxu0  ;;  %v4911_v46 = vsel %vm353_vm3, %v319_v35, %v361_v38  ;;  %vm536_vm3 = vcmask 523264  }
 0x1a8   :  { %v324_v43 = vadd.f32 %v2816_v33, %v323_v42  ;;  %v4908_v44 = vsel %vm352_vm2, %v314_v37, %v360_v40 }
 0x1a9   :  { %v363_v45 = vmul.f32 0.01, %v329_v41  ;;  %3303 = vmatprep.mubr.f32.mxu1 %v4908_v44  ;;  %vm355_vm5 = vcmp.gt.f32.partialorder %v329_v41, 0.0 }
 0x1aa   :  { %v362_v47 = vmul.f32 0.01, %v324_v43  ;;  %v3267_v48 = vpop.f32.mrb[4].mxu0  ;;  %3304 = vmatmul.mubr.f32.vlgmr.msra.gmra.mrb[0].mxu1 %v4911_v46  ;;  %vm354_vm4 = vcmp.gt.f32.partialorder %v324_v43, 0.0 }
 0x1ab   :  { %v339_v49 = vadd.f32 %v3267_v48, %v2816_v33  ;;  %v333_v50 = vpop.f32.mrb[5].mxu0  ;;  %v4917_v54 = vsel %vm355_vm5, %v329_v41, %v363_v45  ;;  %3989 = vmatpush3.bf16.msra.mxu1 %v3988_v8 }
 0x1ac   :  { %v334_v51 = vadd.f32 %v2816_v33, %v333_v50  ;;  %v4914_v52 = vsel %vm354_vm4, %v324_v43, %v362_v47  ;;  %3990 = vmatprep.subr.bf16.mxu1 %v4620_v2 }
 0x1ad   :  { %v365_v53 = vmul.f32 0.01, %v339_v49  ;;  %3306 = vmatprep.mubr.f32.mxu1 %v4914_v52  ;;  %vm357_vm7 = vcmp.gt.f32.partialorder %v339_v49, 0.0 }
 0x1ae   :  { %v364_v55 = vmul.f32 0.01, %v334_v51  ;;  %v3270_v56 = vpop.f32.mrb[6].mxu0  ;;  %3307 = vmatmul.mubr.f32.gmra.mrb[2].mxu1 %v4917_v54  ;;  %vm356_vm6 = vcmp.gt.f32.partialorder %v334_v51, 0.0 }
 0x1af   :  { %v349_v57 = vadd.f32 %v3270_v56, %v2816_v33  ;;  %v343_v58 = vpop.f32.mrb[7].mxu0  ;;  %v4923_v62 = vsel %vm357_vm7, %v339_v49, %v365_v53  ;;  %3992 = vmatpush3.bf16.msra.mxu1 %v3991_v11 }
 0x1b0   :  { %v344_v59 = vadd.f32 %v2816_v33, %v343_v58  ;;  %v4920_v60 = vsel %vm356_vm6, %v334_v51, %v364_v55  ;;  %3993 = vmatprep.subr.bf16.mxu1 %v4620_v2  ;;  %vm1070_vm6 = vcmask 130048  }
 0x1b1   :  { %v367_v61 = vmul.f32 0.01, %v349_v57  ;;  %3309 = vmatprep.mubr.f32.mxu1 %v4920_v60  ;;  %vm359_vm9 = vcmp.gt.f32.partialorder %v349_v57, 0.0 }
 0x1b2   :  { %v366_v63 = vmul.f32 0.01, %v344_v59  ;;  %3310 = vmatmul.mubr.f32.gmra.mrb[4].mxu1 %v4923_v62  ;;  %vm358_vm8 = vcmp.gt.f32.partialorder %v344_v59, 0.0 }
 0x1b3   :  { %v4929_v1 = vsel %vm359_vm9, %v349_v57, %v367_v61  ;;  %3995 = vmatpush3.bf16.msra.mxu1 %v3994_v14  ;;  %v634_v14 = vld [vmem:[#allocation10 + $0x8] sm:$0xff]  ;;  %vm1328_vm9 = vcmask 15360  }
 0x1b4   :  { %v4926_v0 = vsel %vm358_vm8, %v344_v59, %v366_v63  ;;  %3996 = vmatprep.subr.bf16.mxu1 %v4620_v2 }
 0x1b5   :  { %3312 = vmatprep.mubr.f32.mxu1 %v4926_v0 }
 0x1b6   :  { %3313 = vmatmul.mubr.f32.gmra.mrb[6].mxu1 %v4929_v1 }
 0x1b7   :  { %3401 = vmatprep.mubr.msk.f32.mxu1 %vm4621_vm10, %v4622_v3  ;;  %3998 = vmatpush3.bf16.msra.mxu1 %v3997_v17  ;;  %v635_v17 = vld [vmem:[#allocation10 + $0x10] sm:$0xff] }
 0x1b8   :  { %3999 = vmatprep.subr.bf16.mxu1 %v4620_v2  ;;  %v3967_v19 = vpack.c.bf16 %v636_v18, %v635_v17  ;;  %v922_v18 = vld [vmem:[%s5664_s14 + $0x50] sm:$0xff] }
 0x1bb   :  { %4001 = vmatpush3.bf16.msra.mxu1 %v4000_v20  ;;  %v637_v20 = vld [vmem:[#allocation10 + $0x20] sm:$0xff] }
 0x1bc   :  { %4002 = vmatprep.subr.bf16.mxu1 %v4620_v2  ;;  %v3970_v22 = vpack.c.bf16 %v638_v21, %v637_v20  ;;  %v810_v21 = vld [vmem:[%s5661_s11 + $0x50] sm:$0xff] }
 0x1bf   :  { %4004 = vmatpush3.bf16.msra.mxu1 %v4003_v23  ;;  %v639_v23 = vld [vmem:[#allocation10 + $0x30] sm:$0xff] }
 0x1c0   :  { %4005 = vmatprep.subr.bf16.mxu1 %v4620_v2  ;;  %v3973_v25 = vpack.c.bf16 %v640_v24, %v639_v23  ;;  %v924_v24 = vld [vmem:[%s5664_s14 + $0x60] sm:$0xff] }
 0x1c3   :  { %4007 = vmatpush3.bf16.msra.mxu1 %v4006_v26  ;;  %v641_v26 = vld [vmem:[#allocation10 + $0x40] sm:$0xff] }
 0x1c4   :  { %4008 = vmatprep.subr.bf16.mxu1 %v4620_v2  ;;  %v3976_v28 = vpack.c.bf16 %v642_v27, %v641_v26 }
 0x1c7   :  { %4010 = vmatpush3.bf16.msra.mxu1 %v4009_v29  ;;  %v643_v29 = vld [vmem:[#allocation10 + $0x50] sm:$0xff] }
 0x1c8   :  { %4035 = vmatprep.subr.bf16.mxu1 %v4620_v2 }
 0x27d   :  { %v3305_v31 = vpop.f32.mrb[0].mxu1 }
 0x27e   :  { %v471_v32 = vadd.f32 %v3305_v31, %v2826_v30  ;;  %v465_v33 = vpop.f32.mrb[1].mxu1 }
 0x27f   :  { %v466_v34 = vadd.f32 %v2826_v30, %v465_v33  ;;  %v646_v33 = vld [vmem:[#allocation10 + $0x68] sm:$0xff] }
 0x280   :  { %v505_v35 = vadd.f32 %v471_v32, %v4911_v46  ;;  %v645_v32 = vld [vmem:[#allocation10 + $0x60] sm:$0xff] }
 0x281   :  { %v504_v36 = vadd.f32 %v466_v34, %v4908_v44  ;;  %v3308_v37 = vpop.f32.mrb[2].mxu1  ;;  %v3982_v34 = vpack.c.bf16 %v646_v33, %v645_v32  ;;  %v813_v32 = vld [vmem:[%s5661_s11 + $0x68] sm:$0xff] }
 0x282   :  { %vm513_vm11 = vcmp.gt.f32.partialorder %v505_v35, 0.0  ;;  %v521_v38 = vmul.f32 0.01, %v505_v35  ;;  %v481_v39 = vadd.f32 %v3308_v37, %v2826_v30  ;;  %v475_v40 = vpop.f32.mrb[3].mxu1 }
 0x283   :  { %vm512_vm12 = vcmp.gt.f32.partialorder %v504_v36, 0.0  ;;  %v520_v41 = vmul.f32 0.01, %v504_v36  ;;  %v476_v42 = vadd.f32 %v2826_v30, %v475_v40  ;;  %v5005_v40 = vpop.permute.xlu0 %612 }
 0x284   :  { %v4951_v43 = vsel %vm513_vm11, %v505_v35, %v521_v38  ;;  %v507_v45 = vadd.f32 %v481_v39, %v4917_v54  ;;  %v647_v35 = vld [vmem:[#allocation10 + $0x70] sm:$0xff]  ;;  %v912_v38 = vld [vmem:[%s5664_s14] sm:$0xff]  ;;  %v913_v39 = vld [vmem:[%s5664_s14 + $0x8] sm:$0xff]  ;;  %vm1353_vm11 = vcmask 1041408  }
 0x285   :  { %v4954_v47 = vsel %vm512_vm12, %v504_v36, %v520_v41  ;;  %v506_v48 = vadd.f32 %v476_v42, %v4914_v52  ;;  %v3311_v49 = vpop.f32.mrb[4].mxu1  ;;  %v648_v36 = vld [vmem:[#allocation10 + $0x78] sm:$0xff]  ;;  %v801_v42 = vld [vmem:[%s5661_s11 + $0x8] sm:$0xff] }
 0x286   :  { %vm515_vm13 = vcmp.gt.f32.partialorder %v507_v45, 0.0  ;;  %v523_v46 = vmul.f32 0.01, %v507_v45  ;;  %v491_v44 = vadd.f32 %v3311_v49, %v2826_v30  ;;  %v485_v50 = vpop.f32.mrb[5].mxu1  ;;  %v3952_v51 = vpack.c.bf16 %v4951_v43, %v4954_v47  ;;  %v800_v41 = vld [vmem:[%s5661_s11] sm:$0xff] }
 0x287   :  { %vm514_vm14 = vcmp.gt.f32.partialorder %v506_v48, 0.0  ;;  %v522_v53 = vmul.f32 0.01, %v506_v48  ;;  %v486_v55 = vadd.f32 %v2826_v30, %v485_v50  ;;  %v3985_v37 = vpack.c.bf16 %v648_v36, %v647_v35  ;;  %v914_v50 = vld [vmem:[%s5664_s14 + $0x10] sm:$0xff]  ;;  %v815_v35 = vld [vmem:[%s5661_s11 + $0x78] sm:$0xff] }
 0x288   :  { %v4959_v56 = vsel %vm515_vm13, %v507_v45, %v523_v46  ;;  %v509_v57 = vadd.f32 %v491_v44, %v4923_v62  ;;  %3953 = vmatpush3.bf16.msra.mxu0 %v3952_v51  ;;  %v915_v51 = vld [vmem:[%s5664_s14 + $0x18] sm:$0xff] }
 0x289   :  { %v4962_v54 = vsel %vm514_vm14, %v506_v48, %v522_v53  ;;  %v508_v52 = vadd.f32 %v486_v55, %v4920_v60  ;;  %v3314_v58 = vpop.f32.mrb[6].mxu1  ;;  %3954 = vmatprep.subr.bf16.mxu0 %v4620_v2  ;;  %v4036_v48 = vpack.c.bf16 %v913_v39, %v912_v38  ;;  %v4012_v53 = vpack.c.bf16 %v801_v42, %v800_v41  ;;  %v802_v55 = vld [vmem:[%s5661_s11 + $0x10] sm:$0xff]  ;;  %v2828_v39 = vld [vmem:[#allocation11] ss:$0 sm:$0xff] }
 0x28a   :  { %vm517_vm15 = vcmp.gt.f32.partialorder %v509_v57, 0.0  ;;  %v525_v59 = vmul.f32 0.01, %v509_v57  ;;  %v501_v61 = vadd.f32 %v3314_v58, %v2826_v30  ;;  %v495_v63 = vpop.f32.mrb[7].mxu1  ;;  %v3955_v4 = vpack.c.bf16 %v4959_v56, %v4962_v54  ;;  %v916_v58 = vld [vmem:[%s5664_s14 + $0x20] sm:$0xff] }
 0x28b   :  { %vm516_vm0 = vcmp.gt.f32.partialorder %v508_v52, 0.0  ;;  %v524_v5 = vmul.f32 0.01, %v508_v52  ;;  %v496_v6 = vadd.f32 %v2826_v30, %v495_v63  ;;  %v644_v30 = vld [vmem:[#allocation10 + $0x58] sm:$0xff] }
 0x28c   :  { %v4968_v7 = vsel %vm517_vm15, %v509_v57, %v525_v59  ;;  %v511_v62 = vadd.f32 %v501_v61, %v4929_v1  ;;  %3956 = vmatpush3.bf16.msra.mxu0 %v3955_v4  ;;  %v633_v1 = vld [vmem:[#allocation10] sm:$0xff]  ;;  %v3979_v31 = vpack.c.bf16 %v644_v30, %v643_v29  ;;  %v803_v57 = vld [vmem:[%s5661_s11 + $0x18] sm:$0xff] }
 0x28d   :  { %v4971_v8 = vsel %vm516_vm0, %v508_v52, %v524_v5  ;;  %v510_v60 = vadd.f32 %v496_v6, %v4926_v0  ;;  %3957 = vmatprep.subr.bf16.mxu0 %v4620_v2  ;;  %v3964_v16 = vpack.c.bf16 %v634_v14, %v633_v1  ;;  %v4039_v52 = vpack.c.bf16 %v915_v51, %v914_v50  ;;  %v917_v59 = vld [vmem:[%s5664_s14 + $0x28] sm:$0xff]  ;;  %v804_v63 = vld [vmem:[%s5661_s11 + $0x20] sm:$0xff]  ;;  %v918_v6 = vld [vmem:[%s5664_s14 + $0x30] sm:$0xff] }
 0x28e   :  { %vm519_vm1 = vcmp.gt.f32.partialorder %v511_v62, 0.0  ;;  %v527_v9 = vmul.f32 0.01, %v511_v62  ;;  %v3958_v10 = vpack.c.bf16 %v4968_v7, %v4971_v8  ;;  %v4015_v61 = vpack.c.bf16 %v803_v57, %v802_v55  ;;  %v805_v4 = vld [vmem:[%s5661_s11 + $0x28] sm:$0xff]  ;;  %v920_v1 = vld [vmem:[%s5664_s14 + $0x40] sm:$0xff]  ;;  %v927_v29 = vld [vmem:[%s5664_s14 + $0x78] sm:$0xff] }
 0x28f   :  { %vm518_vm2 = vcmp.gt.f32.partialorder %v510_v60, 0.0  ;;  %v526_v11 = vmul.f32 0.01, %v510_v60  ;;  %v4042_v5 = vpack.c.bf16 %v917_v59, %v916_v58  ;;  %v921_v14 = vld [vmem:[%s5664_s14 + $0x48] sm:$0xff]  ;;  %v899_v55 = vld [vmem:[%s5663_s13 + $0x18] sm:$0xff]  ;;  %v900_v58 = vld [vmem:[%s5663_s13 + $0x20] sm:$0xff] }
 0x290   :  { %v4977_v12 = vsel %vm519_vm1, %v511_v62, %v527_v9  ;;  %3959 = vmatpush3.bf16.msra.mxu0 %v3958_v10  ;;  %v919_v62 = vld [vmem:[%s5664_s14 + $0x38] sm:$0xff]  ;;  %v806_v9 = vld [vmem:[%s5661_s11 + $0x30] sm:$0xff]  ;;  %v4048_v17 = vpack.c.bf16 %v921_v14, %v920_v1  ;;  %v901_v59 = vld [vmem:[%s5663_s13 + $0x28] sm:$0xff] }
 0x291   :  { %v4979_v13 = vsel %vm518_vm2, %v510_v60, %v526_v11  ;;  %3960 = vmatprep.subr.bf16.mxu0 %v4620_v2  ;;  %v4018_v60 = vpack.c.bf16 %v805_v4, %v804_v63  ;;  %v807_v10 = vld [vmem:[%s5661_s11 + $0x38] sm:$0xff]  ;;  %v4045_v11 = vpack.c.bf16 %v919_v62, %v918_v6  ;;  %v902_v63 = vld [vmem:[%s5663_s13 + $0x30] sm:$0xff]  ;;  %v904_v6 = vld [vmem:[%s5663_s13 + $0x40] sm:$0xff] }
 0x292   :  { %v3961_v0 = vpack.c.bf16 %v4977_v12, %v4979_v13  ;;  %v903_v4 = vld [vmem:[%s5663_s13 + $0x38] sm:$0xff]  ;;  %v905_v62 = vld [vmem:[%s5663_s13 + $0x48] sm:$0xff]  ;;  %v908_v1 = vld [vmem:[%s5663_s13 + $0x60] sm:$0xff] }
 0x293   :  { %v909_v14 = vld [vmem:[%s5663_s13 + $0x68] sm:$0xff] }
 0x294   :  { %3962 = vmatpush3.bf16.msra.mxu0 %v3961_v0  ;;  %v4021_v0 = vpack.c.bf16 %v807_v10, %v806_v9  ;;  %v906_v9 = vld [vmem:[%s5663_s13 + $0x50] sm:$0xff]  ;;  %v907_v10 = vld [vmem:[%s5663_s13 + $0x58] sm:$0xff] }
 0x295   :  { %3963 = vmatprep.subr.bf16.mxu0 %v4620_v2 }
 0x297   :  { %3332 = vmatmul.mubr.msk.f32.vlgmr.msra.gmra.mrb[8].mxu0 %vm536_vm3, %v200_v15  ;;  %v808_v15 = vld [vmem:[%s5661_s11 + $0x40] sm:$0xff] }
 0x298   :  { %3965 = vmatpush3.bf16.msra.mxu0 %v3964_v16  ;;  %3366 = vmatprep.mubr.msk.f32.mxu0 %vm4621_vm10, %v4622_v3  ;;  %v809_v16 = vld [vmem:[%s5661_s11 + $0x48] sm:$0xff] }
 0x299   :  { %3966 = vmatprep.subr.bf16.mxu0 %v4620_v2  ;;  %v4024_v20 = vpack.c.bf16 %v809_v16, %v808_v15  ;;  %v910_v15 = vld [vmem:[%s5663_s13 + $0x70] sm:$0xff]  ;;  %v911_v16 = vld [vmem:[%s5663_s13 + $0x78] sm:$0xff] }
 0x29c   :  { %3968 = vmatpush3.bf16.msra.mxu0 %v3967_v19  ;;  %v923_v19 = vld [vmem:[%s5664_s14 + $0x58] sm:$0xff] }
 0x29d   :  { %3969 = vmatprep.subr.bf16.mxu0 %v4620_v2  ;;  %v4051_v23 = vpack.c.bf16 %v923_v19, %v922_v18  ;;  %v4081_v19 = vpack.c.bf16 %v911_v16, %v910_v15 }
 0x2a0   :  { %3971 = vmatpush3.bf16.msra.mxu0 %v3970_v22  ;;  %v811_v22 = vld [vmem:[%s5661_s11 + $0x58] sm:$0xff] }
 0x2a1   :  { %3972 = vmatprep.subr.bf16.mxu0 %v4620_v2  ;;  %v4027_v26 = vpack.c.bf16 %v811_v22, %v810_v21  ;;  %v1069_v21 = vld [vmem:[%s5665_s15 + $0x8] sm:$0xff] }
 0x2a4   :  { %3974 = vmatpush3.bf16.msra.mxu0 %v3973_v25  ;;  %v925_v25 = vld [vmem:[%s5664_s14 + $0x68] sm:$0xff] }
 0x2a5   :  { %3975 = vmatprep.subr.bf16.mxu0 %v4620_v2  ;;  %v4054_v27 = vpack.c.bf16 %v925_v25, %v924_v24  ;;  %v1158_v24 = vld [vmem:[%s5667_s17 + $0x10] sm:$0xff] }
 0x2a8   :  { %3977 = vmatpush3.bf16.msra.mxu0 %v3976_v28  ;;  %v926_v28 = vld [vmem:[%s5664_s14 + $0x70] sm:$0xff] }
 0x2a9   :  { %3978 = vmatprep.subr.bf16.mxu0 %v4620_v2  ;;  %v4057_v30 = vpack.c.bf16 %v927_v29, %v926_v28  ;;  %v1160_v28 = vld [vmem:[%s5667_s17 + $0x20] sm:$0xff]  ;;  %v1161_v29 = vld [vmem:[%s5667_s17 + $0x28] sm:$0xff] }
 0x2ac   :  { %3980 = vmatpush3.bf16.msra.mxu0 %v3979_v31  ;;  %v812_v31 = vld [vmem:[%s5661_s11 + $0x60] sm:$0xff] }
 0x2ad   :  { %3981 = vmatprep.subr.bf16.mxu0 %v4620_v2  ;;  %v4030_v33 = vpack.c.bf16 %v813_v32, %v812_v31  ;;  %v1162_v31 = vld [vmem:[%s5667_s17 + $0x30] sm:$0xff]  ;;  %v1163_v32 = vld [vmem:[%s5667_s17 + $0x38] sm:$0xff] }
 0x2b0   :  { %3983 = vmatpush3.bf16.msra.mxu0 %v3982_v34  ;;  %v814_v34 = vld [vmem:[%s5661_s11 + $0x70] sm:$0xff] }
 0x2b1   :  { %3984 = vmatprep.subr.bf16.mxu0 %v4620_v2  ;;  %v4033_v36 = vpack.c.bf16 %v815_v35, %v814_v34  ;;  %v1164_v34 = vld [vmem:[%s5667_s17 + $0x40] sm:$0xff]  ;;  %v1165_v35 = vld [vmem:[%s5667_s17 + $0x48] sm:$0xff] }
 0x2b4   :  { %3986 = vmatpush3.bf16.msra.mxu0 %v3985_v37 }
 0x2b5   :  { %4011 = vmatprep.subr.bf16.mxu0 %v4620_v2 }
 0x36a   :  { %v606_v45 = vpop.f32.mrb[8].mxu0 }
 0x36b   :  { %v5014_v49 = vmul.f32 %v5005_v40, %v606_v45  ;;  %v5016_v46 = vmul.f32 0.01, %v606_v45  ;;  %v3333_v44 = vpop.f32.mrb[9].mxu0 }
 0x36d   :  { %3367 = vmatmul.mubr.f32.vlgmr.msra.gmra.mrb[10].mxu0 %v5014_v49  ;;  %3402 = vmatmul.mubr.f32.vlgmr.msra.gmra.mrb[8].mxu1 %v5016_v46 }
 0x36e   :  { %4037 = vmatpush3.bf16.msra.mxu1 %v4036_v48  ;;  %3471 = vmatprep.mubr.msk.f32.mxu1 %vm4621_vm10, %v4622_v3  ;;  %v896_v48 = vld [vmem:[%s5663_s13] sm:$0xff] }
 0x36f   :  { %4038 = vmatprep.subr.bf16.mxu1 %v4620_v2  ;;  %4013 = vmatpush3.bf16.msra.mxu0 %v4012_v53  ;;  %v898_v53 = vld [vmem:[%s5663_s13 + $0x10] sm:$0xff] }
 0x370   :  { %4014 = vmatprep.subr.bf16.mxu0 %v4620_v2  ;;  %3436 = vmatprep.mubr.msk.f32.mxu0 %vm4621_vm10, %v4622_v3 }
 0x372   :  { %4040 = vmatpush3.bf16.msra.mxu1 %v4039_v52  ;;  %v4063_v52 = vpack.c.bf16 %v899_v55, %v898_v53  ;;  %v1168_v55 = vld [vmem:[%s5667_s17 + $0x60] sm:$0xff] }
 0x373   :  { %4041 = vmatprep.subr.bf16.mxu1 %v4620_v2  ;;  %4016 = vmatpush3.bf16.msra.mxu0 %v4015_v61  ;;  %v4066_v61 = vpack.c.bf16 %v901_v59, %v900_v58  ;;  %v1170_v58 = vld [vmem:[%s5667_s17 + $0x70] sm:$0xff]  ;;  %v1171_v59 = vld [vmem:[%s5667_s17 + $0x78] sm:$0xff] }
 0x374   :  { %4017 = vmatprep.subr.bf16.mxu0 %v4620_v2 }
 0x376   :  { %4043 = vmatpush3.bf16.msra.mxu1 %v4042_v5  ;;  %v4069_v5 = vpack.c.bf16 %v903_v4, %v902_v63  ;;  %v2831_v4 = vld [vmem:[%s5666_s16] ss:$0 sm:$0xff] }
 0x377   :  { %4044 = vmatprep.subr.bf16.mxu1 %v4620_v2  ;;  %4019 = vmatpush3.bf16.msra.mxu0 %v4018_v60  ;;  %v4072_v60 = vpack.c.bf16 %v905_v62, %v904_v6 }
 0x378   :  { %4020 = vmatprep.subr.bf16.mxu0 %v4620_v2 }
 0x37a   :  { %4046 = vmatpush3.bf16.msra.mxu1 %v4045_v11  ;;  %v4075_v11 = vpack.c.bf16 %v907_v10, %v906_v9  ;;  %v1253_v10 = vld [vmem:[%s5670_s20] sm:$0xff] }
 0x37b   :  { %4047 = vmatprep.subr.bf16.mxu1 %v4620_v2  ;;  %4022 = vmatpush3.bf16.msra.mxu0 %v4021_v0  ;;  %v4078_v0 = vpack.c.bf16 %v909_v14, %v908_v1  ;;  %v2832_v14 = vld [vmem:[%s5668_s18] ss:$0 sm:$0xff] }
 0x37c   :  { %4023 = vmatprep.subr.bf16.mxu0 %v4620_v2 }
 0x37e   :  { %4049 = vmatpush3.bf16.msra.mxu1 %v4048_v17 }
 0x37f   :  { %4050 = vmatprep.subr.bf16.mxu1 %v4620_v2  ;;  %4025 = vmatpush3.bf16.msra.mxu0 %v4024_v20  ;;  %v1068_v20 = vld [vmem:[%s5665_s15] sm:$0xff] }
 0x380   :  { %4026 = vmatprep.subr.bf16.mxu0 %v4620_v2  ;;  %v4084_v22 = vpack.c.bf16 %v1069_v21, %v1068_v20  ;;  %v5272_v20 = vld [vmem:[%s5705_s9] sm:$0xff]  ;;  %v1622_v21 = vld [vmem:[#allocation16] sm:$0xff] }
 0x382   :  { %4052 = vmatpush3.bf16.msra.mxu1 %v4051_v23  ;;  %v1156_v23 = vld [vmem:[%s5667_s17] sm:$0xff] }
 0x383   :  { %4053 = vmatprep.subr.bf16.mxu1 %v4620_v2  ;;  %4028 = vmatpush3.bf16.msra.mxu0 %v4027_v26  ;;  %v1159_v26 = vld [vmem:[%s5667_s17 + $0x18] sm:$0xff] }
 0x384   :  { %4029 = vmatprep.subr.bf16.mxu0 %v4620_v2 }
 0x386   :  { %4055 = vmatpush3.bf16.msra.mxu1 %v4054_v27  ;;  %v4090_v27 = vpack.c.bf16 %v1159_v26, %v1158_v24  ;;  %v1625_v24 = vld [vmem:[#allocation16 + $0x18] sm:$0xff]  ;;  %v1626_v26 = vld [vmem:[#allocation16 + $0x20] sm:$0xff] }
 0x387   :  { %4056 = vmatprep.subr.bf16.mxu1 %v4620_v2  ;;  %4031 = vmatpush3.bf16.msra.mxu0 %v4030_v33  ;;  %v4096_v33 = vpack.c.bf16 %v1163_v32, %v1162_v31  ;;  %v1630_v32 = vld [vmem:[#allocation16 + $0x40] sm:$0xff] }
 0x388   :  { %4032 = vmatprep.subr.bf16.mxu0 %v4620_v2 }
 0x38a   :  { %4058 = vmatpush3.bf16.msra.mxu1 %v4057_v30  ;;  %v4093_v30 = vpack.c.bf16 %v1161_v29, %v1160_v28  ;;  %v1628_v29 = vld [vmem:[#allocation16 + $0x30] sm:$0xff] }
 0x38b   :  { %4086 = vmatprep.subr.bf16.mxu1 %v4620_v2  ;;  %4034 = vmatpush3.bf16.msra.mxu0 %v4033_v36  ;;  %v4099_v36 = vpack.c.bf16 %v1165_v35, %v1164_v34  ;;  %v1632_v35 = vld [vmem:[#allocation16 + $0x50] sm:$0xff] }
 0x38c   :  { %4059 = vmatprep.subr.bf16.mxu0 %v4620_v2 }
 0x38d   :  { %3472 = vmatmul.mubr.f32.vlgmr.msra.gmra.mrb[10].mxu1 %v5016_v46  ;;  %v897_v46 = vld [vmem:[%s5663_s13 + $0x8] sm:$0xff] }
 0x38e   :  { %3548 = vmatprep.mubr.msk.f32.mxu1 %vm4621_vm10, %v4622_v3  ;;  %v4060_v51 = vpack.c.bf16 %v897_v46, %v896_v48 }
 0x440   :  { %v715_v37 = vpop.f32.mrb[10].mxu0  ;;  %v785_v38 = vpop.f32.mrb[8].mxu1 }
 0x441   :  { %v786_v41 = vadd.f32 %v785_v38, %v715_v37  ;;  %v3368_v42 = vpop.f32.mrb[11].mxu0  ;;  %v3403_v45 = vpop.f32.mrb[9].mxu1  ;;  %v1166_v37 = vld [vmem:[%s5667_s17 + $0x50] sm:$0xff]  ;;  %v1167_v38 = vld [vmem:[%s5667_s17 + $0x58] sm:$0xff] }
 0x443   :  { %v796_v44 = vadd.f32 %v2828_v39, %v786_v41  ;;  %v4102_v39 = vpack.c.bf16 %v1167_v38, %v1166_v37  ;;  %v2829_v41 = vld [vmem:[#allocation13] ss:$0 sm:$0xff]  ;;  %v1462_v38 = vld [vmem:[#allocation14] sm:$0xff] }
 0x445   :  { %v798_v50 = vmul.f32 0.01, %v796_v44  ;;  %vm797_vm4 = vcmp.gt.f32.partialorder %v796_v44, 0.0 }
 0x447   :  { %v799_v57 = vsel %vm797_vm4, %v796_v44, %v798_v50 }
 0x448   :  { %3437 = vmatmul.mubr.f32.vlgmr.msra.gmra.mrb[12].mxu0 %v799_v57  ;;  %v1169_v57 = vld [vmem:[%s5667_s17 + $0x68] sm:$0xff] }
 0x449   :  { %4061 = vmatpush3.bf16.msra.mxu0 %v4060_v51  ;;  %3506 = vmatprep.mubr.msk.f32.mxu0 %vm4621_vm10, %v4622_v3 }
 0x44a   :  { %4062 = vmatprep.subr.bf16.mxu0 %v4620_v2 }
 0x44d   :  { %4064 = vmatpush3.bf16.msra.mxu0 %v4063_v52  ;;  %v4105_v52 = vpack.c.bf16 %v1169_v57, %v1168_v55  ;;  %v1467_v55 = vld [vmem:[#allocation14 + $0x28] sm:$0xff] }
 0x44e   :  { %4065 = vmatprep.subr.bf16.mxu0 %v4620_v2  ;;  %v5295_v57 = vld [vmem:[%s5705_s9 + $0x18] sm:$0xff] }
 0x451   :  { %4067 = vmatpush3.bf16.msra.mxu0 %v4066_v61  ;;  %v4108_v61 = vpack.c.bf16 %v1171_v59, %v1170_v58  ;;  %v1468_v59 = vld [vmem:[#allocation14 + $0x30] sm:$0xff] }
 0x452   :  { %4068 = vmatprep.subr.bf16.mxu0 %v4620_v2 }
 0x455   :  { %4070 = vmatpush3.bf16.msra.mxu0 %v4069_v5 }
 0x456   :  { %4071 = vmatprep.subr.bf16.mxu0 %v4620_v2 }
 0x459   :  { %4073 = vmatpush3.bf16.msra.mxu0 %v4072_v60 }
 0x45a   :  { %4074 = vmatprep.subr.bf16.mxu0 %v4620_v2 }
 0x45d   :  { %4076 = vmatpush3.bf16.msra.mxu0 %v4075_v11  ;;  %v1254_v11 = vld [vmem:[%s5670_s20 + $0x8] sm:$0xff] }
 0x45e   :  { %4077 = vmatprep.subr.bf16.mxu0 %v4620_v2  ;;  %v4111_v1 = vpack.c.bf16 %v1254_v11, %v1253_v10  ;;  %v1472_v10 = vld [vmem:[#allocation14 + $0x50] sm:$0xff]  ;;  %v1473_v11 = vld [vmem:[#allocation14 + $0x58] sm:$0xff] }
 0x460   :  { %v994_v17 = vpop.f32.mrb[10].mxu1 }
 0x461   :  { %v3473_v18 = vpop.f32.mrb[11].mxu1  ;;  %4079 = vmatpush3.bf16.msra.mxu0 %v4078_v0 }
 0x462   :  { %4080 = vmatprep.subr.bf16.mxu0 %v4620_v2 }
 0x465   :  { %4082 = vmatpush3.bf16.msra.mxu0 %v4081_v19 }
 0x466   :  { %4083 = vmatprep.subr.bf16.mxu0 %v4620_v2 }
 0x468   :  { %3507 = vmatmul.mubr.f32.vlgmr.msra.gmra.mrb[14].mxu0 %v5014_v49  ;;  %v1157_v49 = vld [vmem:[%s5667_s17 + $0x8] sm:$0xff] }
 0x469   :  { %3513 = vmatprep.mubr.msk.f32.mxu0 %vm4621_vm10, %v4622_v3  ;;  %4085 = vmatpush3.bf16.msra.mxu0 %v4084_v22  ;;  %v4087_v25 = vpack.c.bf16 %v1157_v49, %v1156_v23  ;;  %v1623_v22 = vld [vmem:[#allocation16 + $0x8] sm:$0xff]  ;;  %v1624_v23 = vld [vmem:[#allocation16 + $0x10] sm:$0xff] }
 0x46a   :  { %4110 = vmatprep.subr.bf16.mxu0 %v4620_v2  ;;  %v4145_v49 = vpack.c.bf16 %v1623_v22, %v1622_v21  ;;  %v1634_v21 = vld [vmem:[#allocation16 + $0x60] sm:$0xff]  ;;  %v1635_v22 = vld [vmem:[#allocation16 + $0x68] sm:$0xff] }
 0x46b   :  { %4088 = vmatpush3.bf16.msra.mxu1 %v4087_v25  ;;  %v4149_v25 = vpack.c.bf16 %v1625_v24, %v1624_v23  ;;  %v4169_v23 = vpack.c.bf16 %v1635_v22, %v1634_v21  ;;  %v1637_v24 = vld [vmem:[#allocation16 + $0x78] sm:$0xff] }
 0x46c   :  { %4089 = vmatprep.subr.bf16.mxu1 %v4620_v2  ;;  %v2866_v22 = vld [vmem:[%s5664_s14 + $0xa0] sm:$0xff] }
 0x46f   :  { %4091 = vmatpush3.bf16.msra.mxu1 %v4090_v27  ;;  %v1627_v27 = vld [vmem:[#allocation16 + $0x28] sm:$0xff] }
 0x470   :  { %4092 = vmatprep.subr.bf16.mxu1 %v4620_v2  ;;  %v4153_v28 = vpack.c.bf16 %v1627_v27, %v1626_v26  ;;  %v2843_v26 = vld [vmem:[%s5706_s29] ss:$0 sm:$0xff] }
 0x473   :  { %4094 = vmatpush3.bf16.msra.mxu1 %v4093_v30  ;;  %v1629_v30 = vld [vmem:[#allocation16 + $0x38] sm:$0xff] }
 0x474   :  { %4095 = vmatprep.subr.bf16.mxu1 %v4620_v2  ;;  %v4157_v31 = vpack.c.bf16 %v1629_v30, %v1628_v29 }
 0x477   :  { %4097 = vmatpush3.bf16.msra.mxu1 %v4096_v33  ;;  %v1631_v33 = vld [vmem:[#allocation16 + $0x48] sm:$0xff] }
 0x478   :  { %4098 = vmatprep.subr.bf16.mxu1 %v4620_v2  ;;  %v4161_v34 = vpack.c.bf16 %v1631_v33, %v1630_v32 }
 0x47b   :  { %4100 = vmatpush3.bf16.msra.mxu1 %v4099_v36  ;;  %v1633_v36 = vld [vmem:[#allocation16 + $0x58] sm:$0xff] }
 0x47c   :  { %4101 = vmatprep.subr.bf16.mxu1 %v4620_v2  ;;  %v4165_v37 = vpack.c.bf16 %v1633_v36, %v1632_v35 }
 0x47f   :  { %4103 = vmatpush3.bf16.msra.mxu1 %v4102_v39  ;;  %v1463_v39 = vld [vmem:[#allocation14 + $0x8] sm:$0xff] }
 0x480   :  { %4104 = vmatprep.subr.bf16.mxu1 %v4620_v2 }
 0x483   :  { %4106 = vmatpush3.bf16.msra.mxu1 %v4105_v52  ;;  %v5300_v52 = vld [vmem:[%s5705_s9 + $0x20] sm:$0xff] }
 0x484   :  { %4107 = vmatprep.subr.bf16.mxu1 %v4620_v2 }
 0x487   :  { %4109 = vmatpush3.bf16.msra.mxu1 %v4108_v61  ;;  %v1469_v61 = vld [vmem:[#allocation14 + $0x38] sm:$0xff] }
 0x488   :  { %4146 = vmatprep.subr.bf16.mxu1 %v4145_v49 }
 0x51b   :  { %v889_v42 = vpop.f32.mrb[12].mxu0 }
 0x51c   :  { %v890_v45 = vadd.f32 %v2829_v41, %v889_v42  ;;  %v3438_v48 = vpop.f32.mrb[13].mxu0  ;;  %v1464_v41 = vld [vmem:[#allocation14 + $0x10] sm:$0xff]  ;;  %v1465_v42 = vld [vmem:[#allocation14 + $0x18] sm:$0xff] }
 0x51e   :  { %vm893_vm5 = vcmp.gt.f32.partialorder %v890_v45, 0.0  ;;  %v894_v46 = vmul.f32 0.01, %v890_v45 }
 0x520   :  { %v895_v44 = vsel %vm893_vm5, %v890_v45, %v894_v46  ;;  %v4113_v45 = vpack.c.bf16 %v1463_v39, %v1462_v38  ;;  %v5279_v46 = vld [vmem:[%s5705_s9 + $0x8] sm:$0xff] }
 0x521   :  { %3514 = vmatmul.mubr.msk.f32.vlgmr.msra.gmra.mrb[16].mxu0 %vm1070_vm6, %v895_v44 }
 0x522   :  { %3555 = vmatprep.mubr.msk.f32.mxu0 %vm4621_vm10, %v4622_v3  ;;  %4112 = vmatpush3.bf16.msra.mxu0 %v4111_v1  ;;  %v4133_v1 = vpack.c.bf16 %v1473_v11, %v1472_v10 }
 0x53b   :  { %v1064_v50 = vpop.f32.mrb[14].mxu0 }
 0x53c   :  { %v1065_v51 = vadd.f32 %v1064_v50, %v994_v17  ;;  %v3508_v53 = vpop.f32.mrb[15].mxu0  ;;  %v5285_v50 = vld [vmem:[%s5705_s9 + $0x10] sm:$0xff] }
 0x53d   :  { %v1466_v53 = vld [vmem:[#allocation14 + $0x20] sm:$0xff] }
 0x53e   :  { %v4121_v58 = vpack.c.bf16 %v1467_v55, %v1466_v53 }
 0x5f4   :  { %v1140_v63 = vpop.f32.mrb[16].mxu0 }
 0x5f5   :  { %v1144_v5 = vadd.f32 %v1140_v63, %v1065_v51  ;;  %v3515_v6 = vpop.f32.mrb[17].mxu0  ;;  %v4117_v51 = vpack.c.bf16 %v1465_v42, %v1464_v41  ;;  %v5309_v63 = vld [vmem:[%s5705_s9 + $0x28] sm:$0xff] }
 0x5f6   :  { %v1470_v6 = vld [vmem:[#allocation14 + $0x40] sm:$0xff] }
 0x5f7   :  { %v1152_v62 = vadd.f32 %v2831_v4, %v1144_v5  ;;  %v5314_v4 = vld [vmem:[%s5705_s9 + $0x30] sm:$0xff]  ;;  %v4125_v5 = vpack.c.bf16 %v1469_v61, %v1468_v59 }
 0x5f9   :  { %v1154_v60 = vmul.f32 0.01, %v1152_v62  ;;  %vm1153_vm7 = vcmp.gt.f32.partialorder %v1152_v62, 0.0 }
 0x5fb   :  { %v1155_v9 = vsel %vm1153_vm7, %v1152_v62, %v1154_v60  ;;  %v1471_v62 = vld [vmem:[#allocation14 + $0x48] sm:$0xff] }
 0x5fc   :  { %3549 = vmatmul.mubr.f32.vlgmr.msra.gmra.mrb[12].mxu1 %v1155_v9  ;;  %v5323_v60 = vld [vmem:[%s5705_s9 + $0x38] sm:$0xff]  ;;  %v4129_v9 = vpack.c.bf16 %v1471_v62, %v1470_v6 }
 0x5fd   :  { %4148 = vmatpush3.bf16.msra.mxu1 %v4145_v49  ;;  %v1636_v49 = vld [vmem:[#allocation16 + $0x70] sm:$0xff] }
 0x5fe   :  { %4150 = vmatprep.subr.bf16.mxu1 %v4149_v25 }
 0x601   :  { %4152 = vmatpush3.bf16.msra.mxu1 %v4149_v25  ;;  %v4173_v25 = vpack.c.bf16 %v1637_v24, %v1636_v49  ;;  %v2868_v24 = vld [vmem:[%s5664_s14 + $0xb0] sm:$0xff] }
 0x602   :  { %4154 = vmatprep.subr.bf16.mxu1 %v4153_v28 }
 0x605   :  { %4156 = vmatpush3.bf16.msra.mxu1 %v4153_v28 }
 0x606   :  { %4158 = vmatprep.subr.bf16.mxu1 %v4157_v31 }
 0x609   :  { %4160 = vmatpush3.bf16.msra.mxu1 %v4157_v31 }
 0x60a   :  { %4162 = vmatprep.subr.bf16.mxu1 %v4161_v34 }
 0x60d   :  { %4164 = vmatpush3.bf16.msra.mxu1 %v4161_v34 }
 0x60e   :  { %4166 = vmatprep.subr.bf16.mxu1 %v4165_v37 }
 0x611   :  { %4168 = vmatpush3.bf16.msra.mxu1 %v4165_v37 }
 0x612   :  { %4170 = vmatprep.subr.bf16.mxu1 %v4169_v23 }
 0x615   :  { %4172 = vmatpush3.bf16.msra.mxu1 %v4169_v23  ;;  %v2867_v23 = vld [vmem:[%s5664_s14 + $0xa8] sm:$0xff] }
 0x616   :  { %4174 = vmatprep.subr.bf16.mxu1 %v4173_v25  ;;  %v4196_v49 = vpack.c.bf16 %v2867_v23, %v2866_v22 }
 0x619   :  { %4176 = vmatpush3.bf16.msra.mxu1 %v4173_v25  ;;  %v2869_v25 = vld [vmem:[%s5664_s14 + $0xb8] sm:$0xff] }
 0x61a   :  { %4189 = vmatprep.subr.bf16.mxu1 %v4620_v2 }
 0x6cf   :  { %v1245_v0 = vpop.f32.mrb[12].mxu1 }
 0x6d0   :  { %v1246_v15 = vadd.f32 %v2832_v14, %v1245_v0  ;;  %v3550_v16 = vpop.f32.mrb[13].mxu1  ;;  %v1474_v14 = vld [vmem:[#allocation14 + $0x60] sm:$0xff]  ;;  %v1475_v0 = vld [vmem:[#allocation14 + $0x68] sm:$0xff] }
 0x6d1   :  { %v1476_v16 = vld [vmem:[#allocation14 + $0x70] sm:$0xff] }
 0x6d2   :  { %v1249_v17 = vadd.f32 %v1246_v15, %v895_v44  ;;  %v4137_v15 = vpack.c.bf16 %v1475_v0, %v1474_v14  ;;  %v2862_v0 = vld [vmem:[%s5664_s14 + $0x80] sm:$0xff] }
 0x6d4   :  { %vm1250_vm8 = vcmp.gt.f32.partialorder %v1249_v17, 0.0  ;;  %v1251_v18 = vmul.f32 0.01, %v1249_v17 }
 0x6d6   :  { %v5265_v19 = vsel %vm1250_vm8, %v1249_v17, %v1251_v18  ;;  %v1477_v17 = vld [vmem:[#allocation14 + $0x78] sm:$0xff] }
 0x6d7   :  { %3556 = vmatmul.mubr.msk.f32.vlgmr.msra.gmra.mrb[18].mxu0 %vm1070_vm6, %v5265_v19  ;;  %v4141_v18 = vpack.c.bf16 %v1477_v17, %v1476_v16  ;;  %v2864_v17 = vld [vmem:[%s5664_s14 + $0x90] sm:$0xff] }
 0x6d8   :  { %3560 = vmatprep.mubr.msk.f32.mxu0 %vm1328_vm9, %v5272_v20 }
 0x7aa   :  { %v1324_v48 = vpop.f32.mrb[18].mxu0 }
 0x7ab   :  { %v3557_v44 = vpop.f32.mrb[19].mxu0  ;;  %3558 = vmatprep.subr.msk.mxu0 %vm1353_vm11, %v1324_v48 }
 0x7ac   :  { %3559 = vmatpush3.msk.msra.mxu0 %vm1353_vm11, %v1324_v48 }
 0x7ad   :  { %3561 = vmatmul.mubr.msk.f32.vlgmr.msra.gmra.mrb[20].mxu0 %vm1328_vm9, %v5279_v46  ;;  %4114 = vmatprep.subr.bf16.mxu0 %v4113_v45 }
 0x7ae   :  { %4116 = vmatpush3.bf16.msra.mxu0 %v4113_v45  ;;  %3563 = vmatprep.mubr.msk.f32.mxu0 %vm1328_vm9, %v5285_v50 }
 0x7af   :  { %4118 = vmatprep.subr.bf16.mxu0 %v4117_v51 }
 0x7b1   :  { %3564 = vmatmul.mubr.msk.f32.gmra.mrb[22].mxu0 %vm1328_vm9, %v5295_v57 }
 0x7b2   :  { %4120 = vmatpush3.bf16.msra.mxu0 %v4117_v51  ;;  %3566 = vmatprep.mubr.msk.f32.mxu0 %vm1328_vm9, %v5300_v52 }
 0x7b3   :  { %4122 = vmatprep.subr.bf16.mxu0 %v4121_v58 }
 0x7b5   :  { %3567 = vmatmul.mubr.msk.f32.gmra.mrb[24].mxu0 %vm1328_vm9, %v5309_v63 }
 0x7b6   :  { %4124 = vmatpush3.bf16.msra.mxu0 %v4121_v58  ;;  %3569 = vmatprep.mubr.msk.f32.mxu0 %vm1328_vm9, %v5314_v4 }
 0x7b7   :  { %4126 = vmatprep.subr.bf16.mxu0 %v4125_v5 }
 0x7b9   :  { %3570 = vmatmul.mubr.msk.f32.gmra.mrb[26].mxu0 %vm1328_vm9, %v5323_v60 }
 0x7ba   :  { %4128 = vmatpush3.bf16.msra.mxu0 %v4125_v5  ;;  %3604 = vmatprep.mubr.f32.mxu0 %v4954_v47 }
 0x7bb   :  { %4130 = vmatprep.subr.bf16.mxu0 %v4129_v9 }
 0x7be   :  { %4132 = vmatpush3.bf16.msra.mxu0 %v4129_v9 }
 0x7bf   :  { %4134 = vmatprep.subr.bf16.mxu0 %v4133_v1 }
 0x7c2   :  { %4136 = vmatpush3.bf16.msra.mxu0 %v4133_v1 }
 0x7c3   :  { %4138 = vmatprep.subr.bf16.mxu0 %v4137_v15 }
 0x7c6   :  { %4140 = vmatpush3.bf16.msra.mxu0 %v4137_v15  ;;  %v2863_v15 = vld [vmem:[%s5664_s14 + $0x88] sm:$0xff] }
 0x7c7   :  { %4142 = vmatprep.subr.bf16.mxu0 %v4141_v18  ;;  %v4190_v16 = vpack.c.bf16 %v2863_v15, %v2862_v0 }
 0x7ca   :  { %4144 = vmatpush3.bf16.msra.mxu0 %v4141_v18  ;;  %v2865_v18 = vld [vmem:[%s5664_s14 + $0x98] sm:$0xff] }
 0x7cb   :  { %4177 = vmatprep.subr.bf16.mxu0 %v4620_v2  ;;  %v4193_v21 = vpack.c.bf16 %v2865_v18, %v2864_v17 }
 0x7cd   :  { %3605 = vmatmul.mubr.f32.vlgmr.msra.gmra.mrb[20].mxu0 %v4951_v43 }
 0x7ce   :  { %3607 = vmatprep.mubr.f32.mxu0 %v4962_v54 }
 0x7d1   :  { %3608 = vmatmul.mubr.f32.gmra.mrb[22].mxu0 %v4959_v56 }
 0x7d2   :  { %3610 = vmatprep.mubr.f32.mxu0 %v4971_v8 }
 0x7d5   :  { %3611 = vmatmul.mubr.f32.gmra.mrb[24].mxu0 %v4968_v7 }
 0x7d6   :  { %3613 = vmatprep.mubr.f32.mxu0 %v4979_v13 }
 0x7d9   :  { %3614 = vmatmul.mubr.f32.gmra.mrb[26].mxu0 %v4977_v12 }
 0x7da   :  { %3676 = vmatprep.mubr.msk.f32.mxu0 %vm4621_vm10, %v4622_v3 }
 0x8a0   :  { %v3606_v27 = vpop.f32.mrb[20].mxu0 }
 0x8a1   :  { %v1591_v28 = vadd.f32 %v3606_v27, %v2843_v26  ;;  %v1544_v29 = vpop.f32.mrb[21].mxu0  ;;  %v2870_v27 = vld [vmem:[%s5664_s14 + $0xc0] sm:$0xff] }
 0x8a2   :  { %v1590_v30 = vadd.f32 %v2843_v26, %v1544_v29 }
 0x8a3   :  { %v1607_v31 = vmul.f32 0.01, %v1591_v28  ;;  %vm1599_vm12 = vcmp.gt.f32.partialorder %v1591_v28, 0.0 }
 0x8a4   :  { %v1606_v32 = vmul.f32 0.01, %v1590_v30  ;;  %v3609_v33 = vpop.f32.mrb[22].mxu0  ;;  %vm1598_vm13 = vcmp.gt.f32.partialorder %v1590_v30, 0.0 }
 0x8a5   :  { %v1593_v34 = vadd.f32 %v3609_v33, %v2843_v26  ;;  %v1554_v35 = vpop.f32.mrb[23].mxu0  ;;  %v1615_v39 = vsel %vm1599_vm12, %v1591_v28, %v1607_v31  ;;  %v2871_v28 = vld [vmem:[%s5664_s14 + $0xc8] sm:$0xff]  ;;  %v2873_v31 = vld [vmem:[%s5664_s14 + $0xd8] sm:$0xff]  ;;  %v2874_v33 = vld [vmem:[%s5664_s14 + $0xe0] sm:$0xff] }
 0x8a6   :  { %v1592_v36 = vadd.f32 %v2843_v26, %v1554_v35  ;;  %v1614_v37 = vsel %vm1598_vm13, %v1590_v30, %v1606_v32  ;;  %v4202_v29 = vpack.c.bf16 %v2871_v28, %v2870_v27  ;;  %v2872_v30 = vld [vmem:[%s5664_s14 + $0xd0] sm:$0xff] }
 0x8a7   :  { %v1609_v38 = vmul.f32 0.01, %v1593_v34  ;;  %3648 = vmatprep.mubr.f32.mxu1 %v1614_v37  ;;  %vm1601_vm15 = vcmp.gt.f32.partialorder %v1593_v34, 0.0  ;;  %v4205_v32 = vpack.c.bf16 %v2873_v31, %v2872_v30 }
 0x8a8   :  { %v1608_v41 = vmul.f32 0.01, %v1592_v36  ;;  %v3612_v42 = vpop.f32.mrb[24].mxu0  ;;  %3649 = vmatmul.mubr.f32.vlgmr.msra.gmra.mrb[14].mxu1 %v1615_v39  ;;  %vm1600_vm14 = vcmp.gt.f32.partialorder %v1592_v36, 0.0 }
 0x8a9   :  { %v1595_v45 = vadd.f32 %v3612_v42, %v2843_v26  ;;  %v1564_v48 = vpop.f32.mrb[25].mxu0  ;;  %v1617_v55 = vsel %vm1601_vm15, %v1593_v34, %v1609_v38  ;;  %4191 = vmatpush3.bf16.msra.mxu1 %v4190_v16  ;;  %v2875_v34 = vld [vmem:[%s5664_s14 + $0xe8] sm:$0xff] }
 0x8aa   :  { %v1594_v44 = vadd.f32 %v2843_v26, %v1564_v48  ;;  %v1616_v51 = vsel %vm1600_vm14, %v1592_v36, %v1608_v41  ;;  %4192 = vmatprep.subr.bf16.mxu1 %v4620_v2  ;;  %v4208_v35 = vpack.c.bf16 %v2875_v34, %v2874_v33  ;;  %v2844_v36 = vld [vmem:[%s5707_s0] ss:$0 sm:$0xff]  ;;  %v2849_v33 = vld [vmem:[%s5663_s13 + $0x98] sm:$0xff] }
 0x8ab   :  { %v1611_v53 = vmul.f32 0.01, %v1595_v45  ;;  %3651 = vmatprep.mubr.f32.mxu1 %v1616_v51  ;;  %vm1603_vm1 = vcmp.gt.f32.partialorder %v1595_v45, 0.0  ;;  %v5447_v34 = vld [vmem:[%s5704_s26] sm:$0x3] }
 0x8ac   :  { %v1610_v58 = vmul.f32 0.01, %v1594_v44  ;;  %v3615_v59 = vpop.f32.mrb[26].mxu0  ;;  %3652 = vmatmul.mubr.f32.gmra.mrb[16].mxu1 %v1617_v55  ;;  %vm1602_vm0 = vcmp.gt.f32.partialorder %v1594_v44, 0.0 }
 0x8ad   :  { %v1597_v61 = vadd.f32 %v3615_v59, %v2843_v26  ;;  %v1574_v5 = vpop.f32.mrb[27].mxu0  ;;  %v1619_v10 = vsel %vm1603_vm1, %v1595_v45, %v1611_v53  ;;  %4194 = vmatpush3.bf16.msra.mxu1 %v4193_v21 }
 0x8ae   :  { %v1596_v6 = vadd.f32 %v2843_v26, %v1574_v5  ;;  %v1618_v62 = vsel %vm1602_vm0, %v1594_v44, %v1610_v58  ;;  %4195 = vmatprep.subr.bf16.mxu1 %v4620_v2  ;;  %v4199_v26 = vpack.c.bf16 %v2869_v25, %v2868_v24 }
 0x8af   :  { %v1613_v9 = vmul.f32 0.01, %v1597_v61  ;;  %3654 = vmatprep.mubr.f32.mxu1 %v1618_v62  ;;  %vm1605_vm4 = vcmp.gt.f32.partialorder %v1597_v61, 0.0 }
 0x8b0   :  { %v1612_v11 = vmul.f32 0.01, %v1596_v6  ;;  %3655 = vmatmul.mubr.f32.gmra.mrb[18].mxu1 %v1619_v10  ;;  %vm1604_vm2 = vcmp.gt.f32.partialorder %v1596_v6, 0.0 }
 0x8b1   :  { %v1621_v14 = vsel %vm1605_vm4, %v1597_v61, %v1613_v9  ;;  %4197 = vmatpush3.bf16.msra.mxu1 %v4196_v49  ;;  %vm2795_vm4 = vcmask 123904  }
 0x8b2   :  { %v1620_v1 = vsel %vm1604_vm2, %v1596_v6, %v1612_v11  ;;  %4198 = vmatprep.subr.bf16.mxu1 %v4620_v2 }
 0x8b3   :  { %3657 = vmatprep.mubr.f32.mxu1 %v1620_v1 }
 0x8b4   :  { %3658 = vmatmul.mubr.f32.gmra.mrb[20].mxu1 %v1621_v14 }
 0x8b5   :  { %3711 = vmatprep.mubr.msk.f32.mxu1 %vm4621_vm10, %v4622_v3  ;;  %4200 = vmatpush3.bf16.msra.mxu1 %v4199_v26 }
 0x8b6   :  { %4201 = vmatprep.subr.bf16.mxu1 %v4620_v2 }
 0x8b9   :  { %4203 = vmatpush3.bf16.msra.mxu1 %v4202_v29 }
 0x8ba   :  { %4204 = vmatprep.subr.bf16.mxu1 %v4620_v2 }
 0x8bd   :  { %4206 = vmatpush3.bf16.msra.mxu1 %v4205_v32  ;;  %v2848_v32 = vld [vmem:[%s5663_s13 + $0x90] sm:$0xff] }
 0x8be   :  { %4207 = vmatprep.subr.bf16.mxu1 %v4620_v2 }
 0x8c1   :  { %4209 = vmatpush3.bf16.msra.mxu1 %v4208_v35  ;;  %v4217_v35 = vpack.c.bf16 %v2849_v33, %v2848_v32  ;;  %v2891_v32 = vld [vmem:[%s5667_s17 + $0xc0] sm:$0xff]  ;;  %v2892_v33 = vld [vmem:[%s5667_s17 + $0xc8] sm:$0xff] }
 0x8c2   :  { %4210 = vmatprep.subr.bf16.mxu1 %v4620_v2 }
 0x97b   :  { %v3650_v37 = vpop.f32.mrb[14].mxu1 }
 0x97c   :  { %v1717_v38 = vadd.f32 %v3650_v37, %v2844_v36  ;;  %v1711_v39 = vpop.f32.mrb[15].mxu1  ;;  %v2851_v37 = vld [vmem:[%s5663_s13 + $0xa8] sm:$0xff] }
 0x97d   :  { %v1712_v41 = vadd.f32 %v2844_v36, %v1711_v39  ;;  %v2852_v39 = vld [vmem:[%s5663_s13 + $0xb0] sm:$0xff] }
 0x97e   :  { %v1751_v42 = vadd.f32 %v1717_v38, %v4951_v43 }
 0x97f   :  { %v1750_v45 = vadd.f32 %v1712_v41, %v4954_v47  ;;  %v3653_v48 = vpop.f32.mrb[16].mxu1  ;;  %v2853_v41 = vld [vmem:[%s5663_s13 + $0xb8] sm:$0xff] }
 0x980   :  { %vm1759_vm5 = vcmp.gt.f32.partialorder %v1751_v42, 0.0  ;;  %v1767_v44 = vmul.f32 0.01, %v1751_v42  ;;  %v1727_v51 = vadd.f32 %v3653_v48, %v2844_v36  ;;  %v1721_v53 = vpop.f32.mrb[17].mxu1  ;;  %v2855_v48 = vld [vmem:[%s5663_s13 + $0xc8] sm:$0xff] }
 0x981   :  { %vm1758_vm7 = vcmp.gt.f32.partialorder %v1750_v45, 0.0  ;;  %v1766_v55 = vmul.f32 0.01, %v1750_v45  ;;  %v1722_v58 = vadd.f32 %v2844_v36, %v1721_v53  ;;  %v2857_v53 = vld [vmem:[%s5663_s13 + $0xd8] sm:$0xff] }
 0x982   :  { %v5398_v59 = vsel %vm1759_vm5, %v1751_v42, %v1767_v44  ;;  %v1753_v61 = vadd.f32 %v1727_v51, %v4959_v56  ;;  %v4223_v42 = vpack.c.bf16 %v2853_v41, %v2852_v39  ;;  %v2856_v51 = vld [vmem:[%s5663_s13 + $0xd0] sm:$0xff]  ;;  %v2895_v39 = vld [vmem:[%s5667_s17 + $0xe0] sm:$0xff]  ;;  %v2896_v41 = vld [vmem:[%s5667_s17 + $0xe8] sm:$0xff] }
 0x983   :  { %v5401_v5 = vsel %vm1758_vm7, %v1750_v45, %v1766_v55  ;;  %v1752_v6 = vadd.f32 %v1722_v58, %v4962_v54  ;;  %v3656_v62 = vpop.f32.mrb[18].mxu1  ;;  %v2854_v45 = vld [vmem:[%s5663_s13 + $0xc0] sm:$0xff]  ;;  %v4229_v55 = vpack.c.bf16 %v2857_v53, %v2856_v51 }
 0x984   :  { %vm1761_vm8 = vcmp.gt.f32.partialorder %v1753_v61, 0.0  ;;  %v1769_v43 = vmul.f32 0.01, %v1753_v61  ;;  %v1737_v47 = vadd.f32 %v3656_v62, %v2844_v36  ;;  %v1731_v9 = vpop.f32.mrb[19].mxu1  ;;  %v4178_v10 = vpack.c.bf16 %v5398_v59, %v5401_v5  ;;  %v2858_v58 = vld [vmem:[%s5663_s13 + $0xe0] sm:$0xff]  ;;  %v2876_v62 = vld [vmem:[%s5664_s14 + $0xf0] sm:$0xff] }
 0x985   :  { %vm1760_vm12 = vcmp.gt.f32.partialorder %v1752_v6, 0.0  ;;  %v1768_v11 = vmul.f32 0.01, %v1752_v6  ;;  %v1732_v1 = vadd.f32 %v2844_v36, %v1731_v9  ;;  %v4226_v44 = vpack.c.bf16 %v2855_v48, %v2854_v45  ;;  %v2897_v45 = vld [vmem:[%s5667_s17 + $0xf0] sm:$0xff]  ;;  %v2898_v48 = vld [vmem:[%s5667_s17 + $0xf8] sm:$0xff] }
 0x986   :  { %v5406_v14 = vsel %vm1761_vm8, %v1753_v61, %v1769_v43  ;;  %v1755_v0 = vadd.f32 %v1737_v47, %v4968_v7  ;;  %4179 = vmatpush3.bf16.msra.mxu0 %v4178_v10  ;;  %v2859_v61 = vld [vmem:[%s5663_s13 + $0xe8] sm:$0xff]  ;;  %v2877_v43 = vld [vmem:[%s5664_s14 + $0xf8] sm:$0xff]  ;;  %v2860_v47 = vld [vmem:[%s5663_s13 + $0xf0] sm:$0xff] }
 0x987   :  { %v5409_v56 = vsel %vm1760_vm12, %v1752_v6, %v1768_v11  ;;  %v1754_v54 = vadd.f32 %v1732_v1, %v4971_v8  ;;  %v3659_v15 = vpop.f32.mrb[20].mxu1  ;;  %4180 = vmatprep.subr.bf16.mxu0 %v4620_v2  ;;  %v4232_v6 = vpack.c.bf16 %v2859_v61, %v2858_v58  ;;  %v4211_v9 = vpack.c.bf16 %v2877_v43, %v2876_v62  ;;  %v2861_v10 = vld [vmem:[%s5663_s13 + $0xf8] sm:$0xff]  ;;  %v2878_v1 = vld [vmem:[%s5665_s15 + $0x10] sm:$0xff]  ;;  %v2882_v62 = vld [vmem:[%s5666_s16 + $0x1] ss:$0 sm:$0xff] }
 0x988   :  { %vm1763_vm13 = vcmp.gt.f32.partialorder %v1755_v0, 0.0  ;;  %v1771_v16 = vmul.f32 0.01, %v1755_v0  ;;  %v1747_v17 = vadd.f32 %v3659_v15, %v2844_v36  ;;  %v1741_v18 = vpop.f32.mrb[21].mxu1  ;;  %v4181_v21 = vpack.c.bf16 %v5406_v14, %v5409_v56  ;;  %v2884_v15 = vld [vmem:[%s5667_s17 + $0x88] sm:$0xff] }
 0x989   :  { %vm1762_vm14 = vcmp.gt.f32.partialorder %v1754_v54, 0.0  ;;  %v1770_v22 = vmul.f32 0.01, %v1754_v54  ;;  %v1742_v23 = vadd.f32 %v2844_v36, %v1741_v18  ;;  %v2850_v36 = vld [vmem:[%s5663_s13 + $0xa0] sm:$0xff]  ;;  %v4235_v11 = vpack.c.bf16 %v2861_v10, %v2860_v47  ;;  %4212 = vmatpush3.bf16.msra.mxu1 %v4211_v9 }
 0x98a   :  { %v5415_v49 = vsel %vm1763_vm13, %v1755_v0, %v1771_v16  ;;  %v1757_v7 = vadd.f32 %v1747_v17, %v4977_v12  ;;  %4182 = vmatpush3.bf16.msra.mxu0 %v4181_v21  ;;  %v2846_v12 = vld [vmem:[%s5663_s13 + $0x80] sm:$0xff]  ;;  %v4220_v38 = vpack.c.bf16 %v2851_v37, %v2850_v36  ;;  %4240 = vmatprep.subr.bf16.mxu1 %v4620_v2  ;;  %v2879_v0 = vld [vmem:[%s5665_s15 + $0x18] sm:$0xff]  ;;  %v2893_v36 = vld [vmem:[%s5667_s17 + $0xd0] sm:$0xff] }
 0x98b   :  { %v5418_v24 = vsel %vm1762_vm14, %v1754_v54, %v1770_v22  ;;  %v1756_v8 = vadd.f32 %v1742_v23, %v4979_v13  ;;  %4183 = vmatprep.subr.bf16.mxu0 %v4620_v2  ;;  %v2847_v13 = vld [vmem:[%s5663_s13 + $0x88] sm:$0xff]  ;;  %v2883_v54 = vld [vmem:[%s5667_s17 + $0x80] sm:$0xff]  ;;  %v4238_v17 = vpack.c.bf16 %v2879_v0, %v2878_v1  ;;  %v2894_v37 = vld [vmem:[%s5667_s17 + $0xd8] sm:$0xff] }
 0x98c   :  { %vm1765_vm15 = vcmp.gt.f32.partialorder %v1757_v7, 0.0  ;;  %v1773_v25 = vmul.f32 0.01, %v1757_v7  ;;  %v4184_v26 = vpack.c.bf16 %v5415_v49, %v5418_v24  ;;  %v4214_v31 = vpack.c.bf16 %v2847_v13, %v2846_v12  ;;  %v2889_v13 = vld [vmem:[%s5667_s17 + $0xb0] sm:$0xff]  ;;  %v2902_v0 = vld [vmem:[%s5670_s20 + $0x18] sm:$0xff] }
 0x98d   :  { %vm1764_vm0 = vcmp.gt.f32.partialorder %v1756_v8, 0.0  ;;  %v1772_v27 = vmul.f32 0.01, %v1756_v8  ;;  %v4241_v23 = vpack.c.bf16 %v2884_v15, %v2883_v54  ;;  %v2901_v1 = vld [vmem:[%s5670_s20 + $0x10] sm:$0xff]  ;;  %v2900_v15 = vld [vmem:[%s5668_s18 + $0x1] ss:$0 sm:$0xff] }
 0x98e   :  { %v5424_v28 = vsel %vm1765_vm15, %v1757_v7, %v1773_v25  ;;  %4185 = vmatpush3.bf16.msra.mxu0 %v4184_v26  ;;  %v2885_v7 = vld [vmem:[%s5667_s17 + $0x90] sm:$0xff]  ;;  %v2887_v26 = vld [vmem:[%s5667_s17 + $0xa0] sm:$0xff]  ;;  %v4265_v54 = vpack.c.bf16 %v2902_v0, %v2901_v1 }
 0x98f   :  { %v5426_v29 = vsel %vm1764_vm0, %v1756_v8, %v1772_v27  ;;  %4186 = vmatprep.subr.bf16.mxu0 %v4620_v2  ;;  %v2886_v8 = vld [vmem:[%s5667_s17 + $0x98] sm:$0xff]  ;;  %v2888_v27 = vld [vmem:[%s5667_s17 + $0xa8] sm:$0xff] }
 0x990   :  { %v4187_v30 = vpack.c.bf16 %v5424_v28, %v5426_v29  ;;  %v4244_v25 = vpack.c.bf16 %v2886_v8, %v2885_v7  ;;  %v4247_v12 = vpack.c.bf16 %v2888_v27, %v2887_v26  ;;  %v2560_v7 = vld [vmem:[#allocation16 + $0x80] sm:$0xff]  ;;  %v2561_v8 = vld [vmem:[#allocation16 + $0x88] sm:$0xff]  ;;  %v2563_v27 = vld [vmem:[#allocation16 + $0x98] sm:$0xff] }
 0x991   :  { %v4299_v26 = vpack.c.bf16 %v2561_v8, %v2560_v7  ;;  %v2411_v1 = vld [vmem:[#allocation14 + $0xe8] sm:$0xff]  ;;  %v2412_v0 = vld [vmem:[#allocation14 + $0xf0] sm:$0xff] }
 0x992   :  { %4188 = vmatpush3.bf16.msra.mxu0 %v4187_v30  ;;  %v2890_v30 = vld [vmem:[%s5667_s17 + $0xb8] sm:$0xff] }
 0x993   :  { %4213 = vmatprep.subr.bf16.mxu0 %v4620_v2 }
 0x995   :  { %3677 = vmatmul.mubr.msk.f32.vlgmr.msra.gmra.mrb[28].mxu0 %vm536_vm3, %v5447_v34 }
 0x996   :  { %4215 = vmatpush3.bf16.msra.mxu0 %v4214_v31  ;;  %3746 = vmatprep.mubr.msk.f32.mxu0 %vm4621_vm10, %v4622_v3  ;;  %v4250_v31 = vpack.c.bf16 %v2890_v30, %v2889_v13  ;;  %v2564_v13 = vld [vmem:[#allocation16 + $0xa0] sm:$0xff]  ;;  %v2565_v30 = vld [vmem:[#allocation16 + $0xa8] sm:$0xff] }
 0x997   :  { %4216 = vmatprep.subr.bf16.mxu0 %v4620_v2 }
 0x99a   :  { %4218 = vmatpush3.bf16.msra.mxu0 %v4217_v35  ;;  %v4253_v35 = vpack.c.bf16 %v2892_v33, %v2891_v32  ;;  %v2567_v32 = vld [vmem:[#allocation16 + $0xb8] sm:$0xff] }
 0x99b   :  { %4219 = vmatprep.subr.bf16.mxu0 %v4620_v2 }
 0x99e   :  { %4221 = vmatpush3.bf16.msra.mxu0 %v4220_v38  ;;  %v4256_v38 = vpack.c.bf16 %v2894_v37, %v2893_v36  ;;  %v2569_v36 = vld [vmem:[#allocation16 + $0xc8] sm:$0xff]  ;;  %v2570_v37 = vld [vmem:[#allocation16 + $0xd0] sm:$0xff] }
 0x99f   :  { %4222 = vmatprep.subr.bf16.mxu0 %v4620_v2 }
 0x9a2   :  { %4224 = vmatpush3.bf16.msra.mxu0 %v4223_v42  ;;  %v4259_v42 = vpack.c.bf16 %v2896_v41, %v2895_v39  ;;  %v2398_v41 = vld [vmem:[#allocation14 + $0x80] sm:$0xff] }
 0x9a3   :  { %4225 = vmatprep.subr.bf16.mxu0 %v4620_v2 }
 0x9a6   :  { %4227 = vmatpush3.bf16.msra.mxu0 %v4226_v44  ;;  %v4262_v44 = vpack.c.bf16 %v2898_v48, %v2897_v45  ;;  %v2400_v45 = vld [vmem:[#allocation14 + $0x90] sm:$0xff]  ;;  %v2401_v48 = vld [vmem:[#allocation14 + $0x98] sm:$0xff] }
 0x9a7   :  { %4228 = vmatprep.subr.bf16.mxu0 %v4620_v2 }
 0x9aa   :  { %4230 = vmatpush3.bf16.msra.mxu0 %v4229_v55 }
 0x9ab   :  { %4231 = vmatprep.subr.bf16.mxu0 %v4620_v2 }
 0x9ae   :  { %4233 = vmatpush3.bf16.msra.mxu0 %v4232_v6 }
 0x9af   :  { %4234 = vmatprep.subr.bf16.mxu0 %v4620_v2 }
 0x9b2   :  { %4236 = vmatpush3.bf16.msra.mxu0 %v4235_v11 }
 0x9b3   :  { %4237 = vmatprep.subr.bf16.mxu0 %v4620_v2 }
 0xa68   :  { %v1848_v16 = vpop.f32.mrb[28].mxu0 }
 0xa69   :  { %v1852_v18 = vmul.f32 %v1848_v16, %v5005_v40  ;;  %v1853_v21 = vmul.f32 0.01, %v1848_v16  ;;  %v3678_v22 = vpop.f32.mrb[29].mxu0 }
 0xa6b   :  { %3712 = vmatmul.mubr.f32.vlgmr.msra.gmra.mrb[22].mxu1 %v1853_v21  ;;  %3747 = vmatmul.mubr.f32.vlgmr.msra.gmra.mrb[30].mxu0 %v1852_v18 }
 0xa6c   :  { %4239 = vmatpush3.bf16.msra.mxu0 %v4238_v17  ;;  %3753 = vmatprep.mubr.msk.f32.mxu0 %vm4621_vm10, %v4622_v3 }
 0xa6d   :  { %4242 = vmatpush3.bf16.msra.mxu1 %v4241_v23  ;;  %3788 = vmatprep.mubr.msk.f32.mxu1 %vm4621_vm10, %v4622_v3 }
 0xa6e   :  { %4243 = vmatprep.subr.bf16.mxu1 %v4620_v2  ;;  %4264 = vmatprep.subr.bf16.mxu0 %v4620_v2 }
 0xa6f   :  { %3754 = vmatmul.mubr.msk.f32.vlgmr.msra.gmra.mrb[32].mxu0 %vm1070_vm6, %v5265_v19 }
 0xa70   :  { %3795 = vmatprep.mubr.msk.f32.mxu0 %vm4621_vm10, %v4622_v3  ;;  %4266 = vmatpush3.bf16.msra.mxu0 %v4265_v54  ;;  %v2413_v54 = vld [vmem:[#allocation14 + $0xf8] sm:$0xff] }
 0xa71   :  { %4245 = vmatpush3.bf16.msra.mxu1 %v4244_v25  ;;  %v2562_v25 = vld [vmem:[#allocation16 + $0x90] sm:$0xff] }
 0xa72   :  { %4246 = vmatprep.subr.bf16.mxu1 %v4620_v2 }
 0xa75   :  { %4248 = vmatpush3.bf16.msra.mxu1 %v4247_v12  ;;  %v4303_v12 = vpack.c.bf16 %v2563_v27, %v2562_v25 }
 0xa76   :  { %4249 = vmatprep.subr.bf16.mxu1 %v4620_v2 }
 0xa79   :  { %4251 = vmatpush3.bf16.msra.mxu1 %v4250_v31  ;;  %v2566_v31 = vld [vmem:[#allocation16 + $0xb0] sm:$0xff] }
 0xa7a   :  { %4252 = vmatprep.subr.bf16.mxu1 %v4620_v2  ;;  %v4311_v33 = vpack.c.bf16 %v2567_v32, %v2566_v31 }
 0xa7d   :  { %4254 = vmatpush3.bf16.msra.mxu1 %v4253_v35  ;;  %v2568_v35 = vld [vmem:[#allocation16 + $0xc0] sm:$0xff] }
 0xa7e   :  { %4255 = vmatprep.subr.bf16.mxu1 %v4620_v2 }
 0xa81   :  { %4257 = vmatpush3.bf16.msra.mxu1 %v4256_v38  ;;  %v2571_v38 = vld [vmem:[#allocation16 + $0xd8] sm:$0xff] }
 0xa82   :  { %4258 = vmatprep.subr.bf16.mxu1 %v4620_v2  ;;  %v4319_v39 = vpack.c.bf16 %v2571_v38, %v2570_v37 }
 0xa85   :  { %4260 = vmatpush3.bf16.msra.mxu1 %v4259_v42  ;;  %v2399_v42 = vld [vmem:[#allocation14 + $0x88] sm:$0xff] }
 0xa86   :  { %4261 = vmatprep.subr.bf16.mxu1 %v4620_v2 }
 0xa89   :  { %4263 = vmatpush3.bf16.msra.mxu1 %v4262_v44  ;;  %v4267_v44 = vpack.c.bf16 %v2399_v42, %v2398_v41 }
 0xa8a   :  { %4300 = vmatprep.subr.bf16.mxu1 %v4299_v26 }
 0xb3e   :  { %v1954_v51 = vpop.f32.mrb[22].mxu1  ;;  %v2024_v53 = vpop.f32.mrb[30].mxu0 }
 0xb3f   :  { %v2025_v55 = vadd.f32 %v2024_v53, %v1954_v51  ;;  %v3713_v58 = vpop.f32.mrb[23].mxu1  ;;  %v3748_v61 = vpop.f32.mrb[31].mxu0 }
 0xb40   :  { %v2402_v58 = vld [vmem:[#allocation14 + $0xa0] sm:$0xff]  ;;  %v2403_v61 = vld [vmem:[#allocation14 + $0xa8] sm:$0xff] }
 0xb42   :  { %v2097_v6 = vpop.f32.mrb[32].mxu0 }
 0xb43   :  { %v2101_v43 = vadd.f32 %v2097_v6, %v2025_v55  ;;  %v3755_v47 = vpop.f32.mrb[33].mxu0  ;;  %v4271_v55 = vpack.c.bf16 %v2401_v48, %v2400_v45  ;;  %v4275_v6 = vpack.c.bf16 %v2403_v61, %v2402_v58 }
 0xb45   :  { %v2110_v9 = vadd.f32 %v2882_v62, %v2101_v43  ;;  %v2404_v62 = vld [vmem:[#allocation14 + $0xb0] sm:$0xff]  ;;  %v2405_v43 = vld [vmem:[#allocation14 + $0xb8] sm:$0xff] }
 0xb46   :  { %v4279_v47 = vpack.c.bf16 %v2405_v43, %v2404_v62  ;;  %v2916_v43 = vld [vmem:[%s5707_s0 + $0x1] ss:$0 sm:$0xff]  ;;  %s4624_s0 = smov [#allocation17]  }
 0xb47   :  { %v2112_v10 = vmul.f32 0.01, %v2110_v9  ;;  %vm2111_vm1 = vcmp.gt.f32.partialorder %v2110_v9, 0.0  ;;  %s2803_s24 = sshll.u32 %s4624_s0, 4  ;;  %s2804_s24 = int_to_ptr.vmem [resolvable:$true] %s2803_s24 }
 0xb48   :  { %s4575_s1 = scalar_lea.vmem %s2804_s24, 96  ;;  %p4580_p3 = scmp.lt.s32.totalorder %s2804_s24, %s2804_s24 }
 0xb49   :  { %v2113_v11 = vsel %vm2111_vm1, %v2110_v9, %v2112_v10  ;;  %v2406_v9 = vld [vmem:[#allocation14 + $0xc0] sm:$0xff]  ;;  %v2408_v10 = vld [vmem:[#allocation14 + $0xd0] sm:$0xff]  ;;  %p4576_p2 = scmp.ne.s32.totalorder %s2804_s24, %s4575_s1  ;;  %p4581_p4 = scmp.lt.s32.totalorder %s4575_s1, %s4575_s1 }
 0xb4a   :  { %3789 = vmatmul.mubr.f32.vlgmr.msra.gmra.mrb[24].mxu1 %v2113_v11  ;;  %v2409_v11 = vld [vmem:[#allocation14 + $0xd8] sm:$0xff] }
 0xb4b   :  { %4302 = vmatpush3.bf16.msra.mxu1 %v4299_v26  ;;  %p4582_p5 = por %p4581_p4, %p4580_p3 }
 0xb4c   :  { %4304 = vmatprep.subr.bf16.mxu1 %v4303_v12 }
 0xb4d   :  { %p4583_p6 = pnand %p4582_p5, %p4576_p2 }
 0xb4f   :  { %4306 = vmatpush3.bf16.msra.mxu1 %v4303_v12 }
 0xc1d   :  { %v2205_v16 = vpop.f32.mrb[24].mxu1 }
 0xc1e   :  { %v2206_v17 = vadd.f32 %v2900_v15, %v2205_v16  ;;  %v3790_v18 = vpop.f32.mrb[25].mxu1  ;;  %v2573_v15 = vld [vmem:[#allocation16 + $0xe8] sm:$0xff] }
 0xc1f   :  { %v2575_v18 = vld [vmem:[#allocation16 + $0xf8] sm:$0xff] }
 0xc20   :  { %v2209_v21 = vadd.f32 %v2206_v17, %v5265_v19  ;;  %v4307_v19 = vpack.c.bf16 %v2565_v30, %v2564_v13  ;;  %v2574_v17 = vld [vmem:[#allocation16 + $0xf0] sm:$0xff] }
 0xc22   :  { %vm2210_vm2 = vcmp.gt.f32.partialorder %v2209_v21, 0.0  ;;  %v2211_v22 = vmul.f32 0.01, %v2209_v21  ;;  %4308 = vmatprep.subr.bf16.mxu1 %v4307_v19 }
 0xc23   :  { %4310 = vmatpush3.bf16.msra.mxu1 %v4307_v19 }
 0xc24   :  { %v2212_v23 = vsel %vm2210_vm2, %v2209_v21, %v2211_v22  ;;  %4312 = vmatprep.subr.bf16.mxu1 %v4311_v33  ;;  %v4327_v21 = vpack.c.bf16 %v2575_v18, %v2574_v17  ;;  %v2914_v22 = vld [vmem:[%s5706_s29 + $0x1] ss:$0 sm:$0xff] }
 0xc25   :  { %3796 = vmatmul.mubr.msk.f32.vlgmr.msra.gmra.mrb[34].mxu0 %vm1070_vm6, %v2212_v23  ;;  %2796 = vst.msk [vmem:[#allocation17 + $0x4] sm:$0x3] %vm2795_vm4, %v2212_v23 }
 0xc26   :  { %3800 = vmatprep.mubr.msk.f32.mxu0 %vm1328_vm9, %v5272_v20  ;;  %v4315_v20 = vpack.c.bf16 %v2569_v36, %v2568_v35 }
 0xc27   :  { %4314 = vmatpush3.bf16.msra.mxu1 %v4311_v33 }
 0xc28   :  { %4316 = vmatprep.subr.bf16.mxu1 %v4315_v20 }
 0xc2b   :  { %4318 = vmatpush3.bf16.msra.mxu1 %v4315_v20 }
 0xc2c   :  { %4320 = vmatprep.subr.bf16.mxu1 %v4319_v39 }
 0xc2f   :  { %4322 = vmatpush3.bf16.msra.mxu1 %v4319_v39 }
 0xcf8   :  { %v2285_v51 = vpop.f32.mrb[34].mxu0 }
 0xcf9   :  { %v3797_v53 = vpop.f32.mrb[35].mxu0  ;;  %3798 = vmatprep.subr.msk.mxu0 %vm1353_vm11, %v2285_v51 }
 0xcfa   :  { %3799 = vmatpush3.msk.msra.mxu0 %vm1353_vm11, %v2285_v51 }
 0xcfb   :  { %3801 = vmatmul.mubr.msk.f32.vlgmr.msra.gmra.mrb[36].mxu0 %vm1328_vm9, %v5279_v46  ;;  %4268 = vmatprep.subr.bf16.mxu0 %v4267_v44  ;;  %v2407_v46 = vld [vmem:[#allocation14 + $0xc8] sm:$0xff] }
 0xcfc   :  { %4270 = vmatpush3.bf16.msra.mxu0 %v4267_v44  ;;  %3803 = vmatprep.mubr.msk.f32.mxu0 %vm1328_vm9, %v5285_v50  ;;  %v4283_v50 = vpack.c.bf16 %v2407_v46, %v2406_v9 }
 0xcfd   :  { %4272 = vmatprep.subr.bf16.mxu0 %v4271_v55 }
 0xcff   :  { %3804 = vmatmul.mubr.msk.f32.gmra.mrb[38].mxu0 %vm1328_vm9, %v5295_v57  ;;  %v4287_v57 = vpack.c.bf16 %v2409_v11, %v2408_v10 }
 0xd00   :  { %4274 = vmatpush3.bf16.msra.mxu0 %v4271_v55  ;;  %3806 = vmatprep.mubr.msk.f32.mxu0 %vm1328_vm9, %v5300_v52  ;;  %v2410_v52 = vld [vmem:[#allocation14 + $0xe0] sm:$0xff] }
 0xd01   :  { %4276 = vmatprep.subr.bf16.mxu0 %v4275_v6 }
 0xd03   :  { %3807 = vmatmul.mubr.msk.f32.gmra.mrb[40].mxu0 %vm1328_vm9, %v5309_v63  ;;  %v4291_v63 = vpack.c.bf16 %v2411_v1, %v2410_v52 }
 0xd04   :  { %4278 = vmatpush3.bf16.msra.mxu0 %v4275_v6  ;;  %3809 = vmatprep.mubr.msk.f32.mxu0 %vm1328_vm9, %v5314_v4  ;;  %v4295_v4 = vpack.c.bf16 %v2413_v54, %v2412_v0 }
 0xd05   :  { %4280 = vmatprep.subr.bf16.mxu0 %v4279_v47 }
 0xd07   :  { %3810 = vmatmul.mubr.msk.f32.gmra.mrb[42].mxu0 %vm1328_vm9, %v5323_v60  ;;  %v2572_v60 = vld [vmem:[#allocation16 + $0xe0] sm:$0xff] }
 0xd08   :  { %4282 = vmatpush3.bf16.msra.mxu0 %v4279_v47  ;;  %3844 = vmatprep.mubr.f32.mxu0 %v5401_v5  ;;  %v4323_v16 = vpack.c.bf16 %v2573_v15, %v2572_v60 }
 0xd09   :  { %4284 = vmatprep.subr.bf16.mxu0 %v4283_v50 }
 0xd0a   :  { %4324 = vmatprep.subr.bf16.mxu1 %v4323_v16 }
 0xd0b   :  { %4326 = vmatpush3.bf16.msra.mxu1 %v4323_v16 }
 0xd0c   :  { %4286 = vmatpush3.bf16.msra.mxu0 %v4283_v50  ;;  %4328 = vmatprep.subr.bf16.mxu1 %v4327_v21 }
 0xd0d   :  { %4288 = vmatprep.subr.bf16.mxu0 %v4287_v57 }
 0xd0f   :  { %4330 = vmatpush3.bf16.msra.mxu1 %v4327_v21 }
 0xd10   :  { %4290 = vmatpush3.bf16.msra.mxu0 %v4287_v57 }
 0xd11   :  { %4292 = vmatprep.subr.bf16.mxu0 %v4291_v63 }
 0xd14   :  { %4294 = vmatpush3.bf16.msra.mxu0 %v4291_v63 }
 0xd15   :  { %4296 = vmatprep.subr.bf16.mxu0 %v4295_v4 }
 0xd18   :  { %4298 = vmatpush3.bf16.msra.mxu0 %v4295_v4 }
 0xd19   :  { %4331 = vmatprep.subr.bf16.mxu0 %v4620_v2 }
 0xd1b   :  { %3845 = vmatmul.mubr.f32.vlgmr.msra.gmra.mrb[36].mxu0 %v5398_v59 }
 0xd1c   :  { %3847 = vmatprep.mubr.f32.mxu0 %v5409_v56 }
 0xd1f   :  { %3848 = vmatmul.mubr.f32.gmra.mrb[38].mxu0 %v5406_v14 }
 0xd20   :  { %3850 = vmatprep.mubr.f32.mxu0 %v5418_v24 }
 0xd23   :  { %3851 = vmatmul.mubr.f32.gmra.mrb[40].mxu0 %v5415_v49 }
 0xd24   :  { %3853 = vmatprep.mubr.f32.mxu0 %v5426_v29 }
 0xd27   :  { %3854 = vmatmul.mubr.f32.gmra.mrb[42].mxu0 %v5424_v28 }
 0xd28   :  { %3916 = vmatprep.mubr.msk.f32.mxu0 %vm4621_vm10, %v4622_v3 }
 0xdee   :  { %v3846_v23 = vpop.f32.mrb[36].mxu0 }
 0xdef   :  { %v2528_v7 = vadd.f32 %v3846_v23, %v2914_v22  ;;  %v2480_v8 = vpop.f32.mrb[37].mxu0 }
 0xdf0   :  { %v2527_v25 = vadd.f32 %v2914_v22, %v2480_v8 }
 0xdf1   :  { %v2544_v26 = vmul.f32 0.01, %v2528_v7  ;;  %vm2536_vm10 = vcmp.gt.f32.partialorder %v2528_v7, 0.0 }
 0xdf2   :  { %v2543_v3 = vmul.f32 0.01, %v2527_v25  ;;  %v3849_v27 = vpop.f32.mrb[38].mxu0  ;;  %vm2535_vm6 = vcmp.gt.f32.partialorder %v2527_v25, 0.0 }
 0xdf3   :  { %v2530_v12 = vadd.f32 %v3849_v27, %v2914_v22  ;;  %v2490_v13 = vpop.f32.mrb[39].mxu0  ;;  %v2552_v32 = vsel %vm2536_vm10, %v2528_v7, %v2544_v26 }
 0xdf4   :  { %v2529_v30 = vadd.f32 %v2914_v22, %v2490_v13  ;;  %v2551_v19 = vsel %vm2535_vm6, %v2527_v25, %v2543_v3 }
 0xdf5   :  { %v2546_v31 = vmul.f32 0.01, %v2530_v12  ;;  %3888 = vmatprep.mubr.f32.mxu1 %v2551_v19  ;;  %vm2538_vm11 = vcmp.gt.f32.partialorder %v2530_v12, 0.0 }
 0xdf6   :  { %v2545_v33 = vmul.f32 0.01, %v2529_v30  ;;  %v3852_v35 = vpop.f32.mrb[40].mxu0  ;;  %3889 = vmatmul.mubr.f32.vlgmr.msra.gmra.mrb[26].mxu1 %v2552_v32  ;;  %vm2537_vm9 = vcmp.gt.f32.partialorder %v2529_v30, 0.0 }
 0xdf7   :  { %v2532_v36 = vadd.f32 %v3852_v35, %v2914_v22  ;;  %v2500_v20 = vpop.f32.mrb[41].mxu0  ;;  %v2554_v41 = vsel %vm2538_vm11, %v2530_v12, %v2546_v31 }
 0xdf8   :  { %v2531_v37 = vadd.f32 %v2914_v22, %v2500_v20  ;;  %v2553_v38 = vsel %vm2537_vm9, %v2529_v30, %v2545_v33 }
 0xdf9   :  { %v2548_v39 = vmul.f32 0.01, %v2532_v36  ;;  %3891 = vmatprep.mubr.f32.mxu1 %v2553_v38  ;;  %vm2540_vm7 = vcmp.gt.f32.partialorder %v2532_v36, 0.0 }
 0xdfa   :  { %v2547_v42 = vmul.f32 0.01, %v2531_v37  ;;  %v3855_v45 = vpop.f32.mrb[42].mxu0  ;;  %3892 = vmatmul.mubr.f32.gmra.mrb[28].mxu1 %v2554_v41  ;;  %vm2539_vm5 = vcmp.gt.f32.partialorder %v2531_v37, 0.0 }
 0xdfb   :  { %v2534_v48 = vadd.f32 %v3855_v45, %v2914_v22  ;;  %v2510_v44 = vpop.f32.mrb[43].mxu0  ;;  %v2556_v58 = vsel %vm2540_vm7, %v2532_v36, %v2548_v39 }
 0xdfc   :  { %v2533_v51 = vadd.f32 %v2914_v22, %v2510_v44  ;;  %v2555_v53 = vsel %vm2539_vm5, %v2531_v37, %v2547_v42 }
 0xdfd   :  { %v2550_v55 = vmul.f32 0.01, %v2534_v48  ;;  %3894 = vmatprep.mubr.f32.mxu1 %v2555_v53  ;;  %vm2542_vm12 = vcmp.gt.f32.partialorder %v2534_v48, 0.0 }
 0xdfe   :  { %v2549_v61 = vmul.f32 0.01, %v2533_v51  ;;  %3895 = vmatmul.mubr.f32.gmra.mrb[30].mxu1 %v2556_v58  ;;  %vm2541_vm8 = vcmp.gt.f32.partialorder %v2533_v51, 0.0 }
 0xdff   :  { %v2558_v62 = vsel %vm2542_vm12, %v2534_v48, %v2550_v55 }
 0xe00   :  { %v2557_v6 = vsel %vm2541_vm8, %v2533_v51, %v2549_v61 }
 0xe01   :  { %3897 = vmatprep.mubr.f32.mxu1 %v2557_v6 }
 0xe02   :  { %3898 = vmatmul.mubr.f32.gmra.mrb[32].mxu1 %v2558_v62 }
 0xec9   :  { %v3890_v47 = vpop.f32.mrb[26].mxu1 }
 0xeca   :  { %v2656_v9 = vadd.f32 %v3890_v47, %v2916_v43  ;;  %v2650_v46 = vpop.f32.mrb[27].mxu1 }
 0xecb   :  { %v2651_v50 = vadd.f32 %v2916_v43, %v2650_v46 }
 0xecc   :  { %v2690_v10 = vadd.f32 %v2656_v9, %v5398_v59 }
 0xecd   :  { %v2689_v11 = vadd.f32 %v2651_v50, %v5401_v5  ;;  %v3893_v57 = vpop.f32.mrb[28].mxu1 }
 0xece   :  { %vm2698_vm13 = vcmp.gt.f32.partialorder %v2690_v10, 0.0  ;;  %v2706_v52 = vmul.f32 0.01, %v2690_v10  ;;  %v2666_v1 = vadd.f32 %v3893_v57, %v2916_v43  ;;  %v2660_v63 = vpop.f32.mrb[29].mxu1 }
 0xecf   :  { %vm2697_vm14 = vcmp.gt.f32.partialorder %v2689_v11, 0.0  ;;  %v2705_v0 = vmul.f32 0.01, %v2689_v11  ;;  %v2661_v54 = vadd.f32 %v2916_v43, %v2660_v63 }
 0xed0   :  { %v2714_v4 = vsel %vm2698_vm13, %v2690_v10, %v2706_v52  ;;  %v2692_v60 = vadd.f32 %v2666_v1, %v5406_v14 }
 0xed1   :  { %v2713_v15 = vsel %vm2697_vm14, %v2689_v11, %v2705_v0  ;;  %v2691_v16 = vadd.f32 %v2661_v54, %v5409_v56  ;;  %v3896_v17 = vpop.f32.mrb[30].mxu1 }
 0xed2   :  { %vm2700_vm15 = vcmp.gt.f32.partialorder %v2692_v60, 0.0  ;;  %v2708_v18 = vmul.f32 0.01, %v2692_v60  ;;  %v2676_v59 = vadd.f32 %v3896_v17, %v2916_v43  ;;  %v2670_v21 = vpop.f32.mrb[31].mxu1  ;;  %v4332_v5 = vpack.c.bf16 %v2714_v4, %v2713_v15 }
 0xed3   :  { %vm2699_vm0 = vcmp.gt.f32.partialorder %v2691_v16, 0.0  ;;  %v2707_v22 = vmul.f32 0.01, %v2691_v16  ;;  %v2671_v23 = vadd.f32 %v2916_v43, %v2670_v21 }
 0xed4   :  { %v2716_v7 = vsel %vm2700_vm15, %v2692_v60, %v2708_v18  ;;  %v2694_v8 = vadd.f32 %v2676_v59, %v5415_v49  ;;  %4333 = vmatpush3.bf16.msra.mxu0 %v4332_v5 }
 0xed5   :  { %v2715_v25 = vsel %vm2699_vm0, %v2691_v16, %v2707_v22  ;;  %v2693_v26 = vadd.f32 %v2671_v23, %v5418_v24  ;;  %v3899_v14 = vpop.f32.mrb[32].mxu1  ;;  %4334 = vmatprep.subr.bf16.mxu0 %v4620_v2 }
 0xed6   :  { %vm2702_vm1 = vcmp.gt.f32.partialorder %v2694_v8, 0.0  ;;  %v2710_v56 = vmul.f32 0.01, %v2694_v8  ;;  %v2686_v3 = vadd.f32 %v3899_v14, %v2916_v43  ;;  %v2680_v27 = vpop.f32.mrb[33].mxu1  ;;  %v4335_v12 = vpack.c.bf16 %v2716_v7, %v2715_v25 }
 0xed7   :  { %vm2701_vm2 = vcmp.gt.f32.partialorder %v2693_v26, 0.0  ;;  %v2709_v13 = vmul.f32 0.01, %v2693_v26  ;;  %v2681_v30 = vadd.f32 %v2916_v43, %v2680_v27 }
 0xed8   :  { %v2718_v19 = vsel %vm2702_vm1, %v2694_v8, %v2710_v56  ;;  %v2696_v31 = vadd.f32 %v2686_v3, %v5424_v28  ;;  %4336 = vmatpush3.bf16.msra.mxu0 %v4335_v12 }
 0xed9   :  { %v2717_v49 = vsel %vm2701_vm2, %v2693_v26, %v2709_v13  ;;  %v2695_v32 = vadd.f32 %v2681_v30, %v5426_v29  ;;  %4337 = vmatprep.subr.bf16.mxu0 %v4620_v2 }
 0xeda   :  { %vm2704_vm4 = vcmp.gt.f32.partialorder %v2696_v31, 0.0  ;;  %v2712_v24 = vmul.f32 0.01, %v2696_v31  ;;  %v4338_v33 = vpack.c.bf16 %v2718_v19, %v2717_v49 }
 0xedb   :  { %vm2703_vm10 = vcmp.gt.f32.partialorder %v2695_v32, 0.0  ;;  %v2711_v35 = vmul.f32 0.01, %v2695_v32 }
 0xedc   :  { %v2720_v36 = vsel %vm2704_vm4, %v2696_v31, %v2712_v24  ;;  %4339 = vmatpush3.bf16.msra.mxu0 %v4338_v33 }
 0xedd   :  { %v2719_v20 = vsel %vm2703_vm10, %v2695_v32, %v2711_v35  ;;  %4340 = vmatprep.subr.bf16.mxu0 %v4620_v2 }
 0xede   :  { %v4341_v37 = vpack.c.bf16 %v2720_v36, %v2719_v20 }
 0xee0   :  { %4342 = vmatpush3.bf16.msra.mxu0 %v4341_v37 }
 0xee3   :  { %3917 = vmatmul.mubr.msk.f32.vlgmr.msra.gmra.mrb[44].mxu0 %vm536_vm3, %v5447_v34 }
 0xfb6   :  { %v2787_v28 = vpop.f32.mrb[44].mxu0 }
 0xfb7   :  { %v2791_v29 = vmul.f32 %v2787_v28, %v5005_v40  ;;  %v2792_v38 = vmul.f32 0.01, %v2787_v28  ;;  %v3918_v39 = vpop.f32.mrb[45].mxu0 }
 0xfb9   :  { %2793 = vst [vmem:[#allocation17] sm:$0x3] %v2792_v38  ;;  %2794 = vst [vmem:[#allocation17 + $0x2] sm:$0x3] %v2791_v29 }
 0xfba   :  { %4586 = shalt.err (!%p4583_p6)
}
 0xfbb   :  { %s5708_s11 = sld [smem:[#allocation35_spill]] }
 0xfc1   :  { %s4587_s26 = scalar_lea.hbm %s5708_s11, 96 }
 0xfc2   :  { %p4588_p7 = scmp.ne.s32.totalorder %s5708_s11, %s4587_s26  ;;  %p4591_p8 = scmp.lt.u32.totalorder %s4587_s26, %s5708_s11 }
 0xfc4   :  { %p4593_p9 = pnand %p4591_p8, %p4588_p7 }
 0xfc6   :  { %4596 = shalt.err (!%p4593_p9)
}
 0xfc7   :  { %2806 = dma.vmem_to_hbm [thread:$0]  %s2804_s24, 96, %s5708_s11, [#allocation4]  }
 0xfc8   :  { %4607 = dma.done.wait [#allocation4], 96  }
 0xfc9   :  { %4608 = vsyncadd [#allocation4], 4294967200 }
 0xfca   :  { %2810 = vsyncpa [#allocation3], 1 }
 0xfcb   :  { %2811 = vsyncpa [#allocation6], 1 }
 0xfcc   :  { %2812 = vsyncpa [#allocation9], 1 }
 0xfcd   :  { %2813 = vsyncpa [#allocation12], 1 }
 0xfce   :  { %2814 = vsyncpa [#allocation15], 1 }
 0xfcf   :  { %2815 = vsyncpa [#allocation4], 1 }

</bundles_post_ra>
